<compile_context>
chip_gen: v7x
topology: tpu7x:2x2x1
jax: 0.10.0
libtpu: 0.0.40
codegen_flags: <defaults>
</compile_context>

<pallas_src>
import math
from functools import partial

import jax
import jax.numpy as jnp
from jax import lax
from jax.experimental import pallas as pl
from jax.experimental.pallas import tpu as pltpu

LN_EPS = 1e-5  # PyTorch nn.LayerNorm default


# ------------------------------ kernel body --------------------------------

def _layernorm_f32(x, g, b):
    """Two-pass LayerNorm (subtract mean first): avoids E[x^2]-E[x]^2
    cancellation for large late-layer activations; rsqrt goes to the EUP."""
    m = jnp.mean(x, axis=-1, keepdims=True)
    c = x - m
    var = jnp.mean(c * c, axis=-1, keepdims=True)
    return c * lax.rsqrt(var + LN_EPS) * g + b


def fused_block_kernel(
    x_ref,                     # (B_blk, L, D) f32   B_blk batch elements
    ln1_g_ref, ln1_b_ref,      # (1, D)  f32
    wqkv_ref, bqkv_ref,        # (D, 3D) bf16, (1, 3D) f32  (scale folded into Q)
    wo_ref, bo_ref,            # (D, D)  bf16, (1, D)  f32
    ln2_g_ref, ln2_b_ref,      # (1, D)  f32
    wu_ref, bu_ref,            # (D, 4D) bf16, (1, 4D) f32
    wd_ref, bd_ref,            # (4D, D) bf16, (1, D)  f32
    o_ref,                     # (B_blk, L, D) f32
    ao_ref,                    # scratch VMEM (B_blk*L, D) f32  attention output slab
    *, n_head,
):
    b_blk, L, D = x_ref.shape
    hd = D // n_head
    M = b_blk * L

    x = x_ref[...].reshape(M, D)                          # (M, D) f32

    # ---- ln_1 + fused QKV projection (bf16 MXU, f32 accumulate) ----
    xn = _layernorm_f32(x, ln1_g_ref[...], ln1_b_ref[...])
    qkv = jnp.dot(xn.astype(jnp.bfloat16), wqkv_ref[...],
                  preferred_element_type=jnp.float32) + bqkv_ref[...]   # (M, 3D)
    qkv_bf = qkv.astype(jnp.bfloat16)                     # one slab cast (v5e VALU)

    # ---- multi-head attention; per-head outputs written to VMEM scratch ----
    for b in range(b_blk):                                # static unroll
        r0 = b * L
        for h in range(n_head):                           # static unroll
            c0 = h * hd
            q = qkv_bf[r0:r0 + L, 0 * D + c0:0 * D + c0 + hd]
            k = qkv_bf[r0:r0 + L, 1 * D + c0:1 * D + c0 + hd]
            v = qkv_bf[r0:r0 + L, 2 * D + c0:2 * D + c0 + hd]
            # contraction over head_dim, no materialized k.T (scale already
            # folded into the Q projection weights)
            s = lax.dot_general(q, k, (((1,), (1,)), ((), ())),
                                preferred_element_type=jnp.float32)     # (L, L)
            mx = jnp.max(s, axis=-1, keepdims=True)
            p = jnp.exp(s - mx)
            inv = pl.reciprocal(jnp.sum(p, axis=-1, keepdims=True), approx=True)
            attn = (p * inv).astype(jnp.bfloat16)
            ao_ref[r0:r0 + L, c0:c0 + hd] = jnp.dot(
                attn, v, preferred_element_type=jnp.float32)            # (L, hd)

    # ---- attention output projection + residual ----
    y1 = x + jnp.dot(ao_ref[...].astype(jnp.bfloat16), wo_ref[...],
                     preferred_element_type=jnp.float32) + bo_ref[...]

    # ---- ln_2 + MLP (c_fc -> QuickGELU -> c_proj) + residual ----
    h2 = _layernorm_f32(y1, ln2_g_ref[...], ln2_b_ref[...])
    up = jnp.dot(h2.astype(jnp.bfloat16), wu_ref[...],
                 preferred_element_type=jnp.float32) + bu_ref[...]      # (M, 4D)
    act = up * jax.nn.sigmoid(1.702 * up)                 # QuickGELU, f32
    dn = jnp.dot(act.astype(jnp.bfloat16), wd_ref[...],
                 preferred_element_type=jnp.float32) + bd_ref[...]
    o_ref[...] = (y1 + dn).reshape(b_blk, L, D)


# ----------------------- parameter fusion (done once) -----------------------

def prepare_params(params, n_head):
    """Hoisted glue, run once per weight load: weight transposes, bf16 casts,
    and folding 1/sqrt(head_dim) into the Q third of the QKV projection."""
    D = params["ln1_g"].shape[0]
    hd = D // n_head
    scale = 1.0 / math.sqrt(hd)
    bf, f32 = jnp.bfloat16, jnp.float32

    w_qkv = params["in_proj_w"].T.astype(f32)              # (D, 3D)
    b_qkv = params["in_proj_b"].astype(f32)                # (3D,)
    fold = jnp.concatenate(
        [jnp.full((D,), scale, f32), jnp.ones((2 * D,), f32)])
    w_qkv = w_qkv * fold[None, :]
    b_qkv = b_qkv * fold

    return dict(
        ln1_g=params["ln1_g"].reshape(1, D).astype(f32),
        ln1_b=params["ln1_b"].reshape(1, D).astype(f32),
        w_qkv=w_qkv.astype(bf),                            # (D, 3D)
        b_qkv=b_qkv.reshape(1, 3 * D),
        w_out=params["out_proj_w"].T.astype(bf),           # (D, D)
        b_out=params["out_proj_b"].reshape(1, D).astype(f32),
        ln2_g=params["ln2_g"].reshape(1, D).astype(f32),
        ln2_b=params["ln2_b"].reshape(1, D).astype(f32),
        w_up=params["fc_up_w"].T.astype(bf),               # (D, 4D)
        b_up=params["fc_up_b"].reshape(1, 4 * D).astype(f32),
        w_dn=params["fc_dn_w"].T.astype(bf),               # (4D, D)
        b_dn=params["fc_dn_b"].reshape(1, D).astype(f32),
    )


# ------------------------------ block wrapper -------------------------------

def _vmem_budget_bytes(b_blk, L, D):
    """Weights counted once (single-buffered), activation in/out tiles
    double-buffered, intermediates once, + 2 MiB headroom.  Clamped to 56 MiB
    so the budget is valid on v7x (64 MiB physical) and all older parts."""
    M = b_blk * L
    weights = (3 * D * D + D * D + 4 * D * D + 4 * D * D) * 2     # bf16, 1-buffered
    biases = (3 * D + D + 4 * D + D + 4 * D) * 4                  # f32
    act_io = 2 * 2 * M * D * 4                                    # dbl-buffered in/out
    scratch = M * D * 4                                           # attention-out slab
    inter = (3 * M * D + 4 * M * D + 2 * M * D + 2 * L * L) * 4   # qkv, up, y1/dn, scores
    need = weights + biases + act_io + scratch + inter + (2 << 20)
    return int(min(max(need, 4 << 20), 56 << 20))


def residual_attention_block(x, fused, n_head, block_batch=None):
    """x: (N, L, D) float32, batch-first (no host-side transposes).
    Returns (N, L, D)."""
    N, L, D = x.shape
    if block_batch is None:
        # B_blk > 1 fills the 256-wide MXU on v6e/v7x; kept small for v7x VMEM.
        block_batch = next(b for b in (2, 1) if N % b == 0)
    b_blk = block_batch
    assert N % b_blk == 0, "block_batch must divide the batch size"

    weight_args = [
        fused["ln1_g"], fused["ln1_b"],
        fused["w_qkv"], fused["b_qkv"],
        fused["w_out"], fused["b_out"],
        fused["ln2_g"], fused["ln2_b"],
        fused["w_up"], fused["b_up"],
        fused["w_dn"], fused["b_dn"],
    ]

    def wspec(arr):
        # full-array block, constant index_map, single-buffered: weights stay
        # resident in VMEM across all grid steps with no dead second copy.
        return pl.BlockSpec(arr.shape, lambda n: (0, 0),
                            pipeline_mode=pl.Buffered(1))

    in_specs = [pl.BlockSpec((b_blk, L, D), lambda n: (n, 0, 0))]
    in_specs += [wspec(a) for a in weight_args]
    out_spec = pl.BlockSpec((b_blk, L, D), lambda n: (n, 0, 0))

    weight_bytes = sum(a.size * a.dtype.itemsize for a in weight_args)
    cost = pl.CostEstimate(
        flops=N * (2 * L * D * 3 * D + 4 * L * L * D + 2 * L * D * D
                   + 2 * L * D * 4 * D + 2 * L * 4 * D * D),
        transcendentals=N * (n_head * L * L + L * 4 * D),
        bytes_accessed=2 * N * L * D * 4 + weight_bytes,
    )

    return pl.pallas_call(
        partial(fused_block_kernel, n_head=n_head),
        out_shape=jax.ShapeDtypeStruct((N, L, D), jnp.float32),
        grid_spec=pltpu.PrefetchScalarGridSpec(
            num_scalar_prefetch=0,
            grid=(N // b_blk,),
            in_specs=in_specs,
            out_specs=out_spec,
            scratch_shapes=[pltpu.VMEM((b_blk * L, D), jnp.float32)],
        ),
        compiler_params=pltpu.CompilerParams(
            dimension_semantics=("parallel",),            # megacore on v7x
            vmem_limit_bytes=_vmem_budget_bytes(b_blk, L, D),
        ),
        cost_estimate=cost,
    )(x, *weight_args)


# --------------------------- VideoCLIP-style forward ------------------------

def video_clip_forward(image_tokens, fused, n_head, n_seg, logit_scale):
    """Mirrors VideoCLIP.forward: image_emb = visual(image).view(b, n_seg, -1),
    returns (image_emb, logit_scale.exp()).  The 'visual' stack is stood in by
    the fused residual-attention-block kernel with CLS-token pooling."""
    y = residual_attention_block(image_tokens, fused, n_head)   # (BT, L, D)
    emb = y[:, 0, :]                                            # (BT, D)
    bt, d = emb.shape
    b = bt // n_seg
    return emb.reshape(b, n_seg, d), jnp.exp(logit_scale)


# ----------------------------- pure-JAX reference ---------------------------

def reference_block(x, params, n_head):
    N, L, D = x.shape
    H, hd = n_head, D // n_head

    def ln(t, g, b):
        u = jnp.mean(t, -1, keepdims=True)
        s = jnp.mean((t - u) ** 2, -1, keepdims=True)
        return g * ((t - u) / jnp.sqrt(s + LN_EPS)) + b

    h = ln(x, params["ln1_g"], params["ln1_b"])
    qkv = h @ params["in_proj_w"].T + params["in_proj_b"]
    q, k, v = jnp.split(qkv, 3, axis=-1)

    def heads(t):
        return t.reshape(N, L, H, hd).transpose(0, 2, 1, 3)     # (N, H, L, hd)

    q, k, v = heads(q), heads(k), heads(v)
    s = jnp.einsum("nhqd,nhkd->nhqk", q, k) / math.sqrt(hd)
    a = jax.nn.softmax(s, axis=-1)
    o = jnp.einsum("nhqk,nhkd->nhqd", a, v)
    o = o.transpose(0, 2, 1, 3).reshape(N, L, D)
    y1 = x + (o @ params["out_proj_w"].T + params["out_proj_b"])

    h2 = ln(y1, params["ln2_g"], params["ln2_b"])
    up = h2 @ params["fc_up_w"].T + params["fc_up_b"]
    g = up * jax.nn.sigmoid(1.702 * up)
    return y1 + (g @ params["fc_dn_w"].T + params["fc_dn_b"])


# ----------------------------------- main -----------------------------------

if __name__ == "__main__":
    L, N, D = 8, 4, 32          # seq, batch (= b * n_seg), d_model
    H = 4                       # n_head
    N_SEG = 2                   # VideoCLIP segments per video

    key = jax.random.PRNGKey(0)
    ks = jax.random.split(key, 9)

    params = {
        "ln1_g": jnp.ones((D,), jnp.float32),
        "ln1_b": jnp.zeros((D,), jnp.float32),
        "ln2_g": jnp.ones((D,), jnp.float32),
        "ln2_b": jnp.zeros((D,), jnp.float32),
        "in_proj_w": 0.02 * jax.random.normal(ks[0], (3 * D, D), jnp.float32),
        "in_proj_b": 0.02 * jax.random.normal(ks[1], (3 * D,), jnp.float32),
        "out_proj_w": 0.02 * jax.random.normal(ks[2], (D, D), jnp.float32),
        "out_proj_b": 0.02 * jax.random.normal(ks[3], (D,), jnp.float32),
        "fc_up_w": 0.02 * jax.random.normal(ks[4], (4 * D, D), jnp.float32),
        "fc_up_b": 0.02 * jax.random.normal(ks[5], (4 * D,), jnp.float32),
        "fc_dn_w": 0.02 * jax.random.normal(ks[6], (D, 4 * D), jnp.float32),
        "fc_dn_b": 0.02 * jax.random.normal(ks[7], (D,), jnp.float32),
    }
    logit_scale = jnp.asarray(math.log(1.0 / 0.07), jnp.float32)

    # batch-first tokens (no host-side layout transposes anywhere)
    x = jax.random.normal(ks[8], (N, L, D), jnp.float32)

    fused_params = prepare_params(params, n_head=H)        # once per weight load

    out = residual_attention_block(x, fused_params, n_head=H)
    out = jax.block_until_ready(out)

    ref = reference_block(x, params, n_head=H)
    assert out.shape == (N, L, D)
    # bf16 matmul operands + approx reciprocal -> loosened tolerance vs f32 ref
    assert bool(jnp.allclose(out, ref, atol=2e-2, rtol=2e-2)), "mismatch vs reference"

    emb, scale = video_clip_forward(x, fused_params, H, N_SEG, logit_scale)
    emb = jax.block_until_ready(emb)
    assert emb.shape == (N // N_SEG, N_SEG, D)
    assert bool(jnp.isfinite(scale))

    print("KERNEL_OK")
</pallas_src>

<mosaic_0001>
module attributes {stable_mosaic.version = 11 : i64} {
  func.func @fused_block_kernel(%arg0: i32, %arg1: memref<2x8x32xf32, #tpu.memory_space<vmem>>, %arg2: memref<1x32xf32, #tpu.memory_space<vmem>>, %arg3: memref<1x32xf32, #tpu.memory_space<vmem>>, %arg4: memref<32x96xbf16, #tpu.memory_space<vmem>>, %arg5: memref<1x96xf32, #tpu.memory_space<vmem>>, %arg6: memref<32x32xbf16, #tpu.memory_space<vmem>>, %arg7: memref<1x32xf32, #tpu.memory_space<vmem>>, %arg8: memref<1x32xf32, #tpu.memory_space<vmem>>, %arg9: memref<1x32xf32, #tpu.memory_space<vmem>>, %arg10: memref<32x128xbf16, #tpu.memory_space<vmem>>, %arg11: memref<1x128xf32, #tpu.memory_space<vmem>>, %arg12: memref<128x32xbf16, #tpu.memory_space<vmem>>, %arg13: memref<1x32xf32, #tpu.memory_space<vmem>>, %arg14: memref<2x8x32xf32, #tpu.memory_space<vmem>>, %arg15: memref<16x32xf32, #tpu.memory_space<vmem>>) attributes {dimension_semantics = [#tpu.dimension_semantics<parallel>], iteration_bounds = array<i64: 2>, scalar_prefetch = 0 : i64, scratch_operands = 1 : i64, tpu.core_type = #tpu.core_type<tc>, window_params = [{transform_indices = @transform_0, window_bounds = array<i64: 2, 8, 32>}, {pipeline_mode = #tpu.pipeline_mode<synchronous>, transform_indices = @transform_1, window_bounds = array<i64: 1, 32>}, {pipeline_mode = #tpu.pipeline_mode<synchronous>, transform_indices = @transform_2, window_bounds = array<i64: 1, 32>}, {pipeline_mode = #tpu.pipeline_mode<synchronous>, transform_indices = @transform_3, window_bounds = array<i64: 32, 96>}, {pipeline_mode = #tpu.pipeline_mode<synchronous>, transform_indices = @transform_4, window_bounds = array<i64: 1, 96>}, {pipeline_mode = #tpu.pipeline_mode<synchronous>, transform_indices = @transform_5, window_bounds = array<i64: 32, 32>}, {pipeline_mode = #tpu.pipeline_mode<synchronous>, transform_indices = @transform_6, window_bounds = array<i64: 1, 32>}, {pipeline_mode = #tpu.pipeline_mode<synchronous>, transform_indices = @transform_7, window_bounds = array<i64: 1, 32>}, {pipeline_mode = #tpu.pipeline_mode<synchronous>, transform_indices = @transform_8, window_bounds = array<i64: 1, 32>}, {pipeline_mode = #tpu.pipeline_mode<synchronous>, transform_indices = @transform_9, window_bounds = array<i64: 32, 128>}, {pipeline_mode = #tpu.pipeline_mode<synchronous>, transform_indices = @transform_10, window_bounds = array<i64: 1, 128>}, {pipeline_mode = #tpu.pipeline_mode<synchronous>, transform_indices = @transform_11, window_bounds = array<i64: 128, 32>}, {pipeline_mode = #tpu.pipeline_mode<synchronous>, transform_indices = @transform_12, window_bounds = array<i64: 1, 32>}, {transform_indices = @transform_13, window_bounds = array<i64: 2, 8, 32>}]} {
    %c0 = arith.constant 0 : index
    %c0_0 = arith.constant 0 : index
    %c0_1 = arith.constant 0 : index
    %0 = vector.load %arg1[%c0, %c0_0, %c0_1] : memref<2x8x32xf32, #tpu.memory_space<vmem>>, vector<2x8x32xf32>
    %1 = vector.shape_cast %0 : vector<2x8x32xf32> to vector<16x32xf32>
    %c0_2 = arith.constant 0 : index
    %c0_3 = arith.constant 0 : index
    %2 = vector.load %arg2[%c0_2, %c0_3] : memref<1x32xf32, #tpu.memory_space<vmem>>, vector<1x32xf32>
    %c0_4 = arith.constant 0 : index
    %c0_5 = arith.constant 0 : index
    %3 = vector.load %arg3[%c0_4, %c0_5] : memref<1x32xf32, #tpu.memory_space<vmem>>, vector<1x32xf32>
    %cst = arith.constant dense<0.000000e+00> : vector<16xf32>
    %4 = vector.multi_reduction <add>, %1, %cst [1] : vector<16x32xf32> to vector<16xf32>
    %5 = vector.shape_cast %4 : vector<16xf32> to vector<16x1xf32>
    %cst_6 = arith.constant 3.200000e+01 : f32
    %6 = vector.broadcast %cst_6 : f32 to vector<16x1xf32>
    %7 = arith.divf %5, %6 : vector<16x1xf32>
    %8 = vector.broadcast %7 : vector<16x1xf32> to vector<16x32xf32>
    %9 = arith.subf %1, %8 : vector<16x32xf32>
    %10 = arith.mulf %9, %9 : vector<16x32xf32>
    %cst_7 = arith.constant dense<0.000000e+00> : vector<16xf32>
    %11 = vector.multi_reduction <add>, %10, %cst_7 [1] : vector<16x32xf32> to vector<16xf32>
    %12 = vector.shape_cast %11 : vector<16xf32> to vector<16x1xf32>
    %cst_8 = arith.constant 3.200000e+01 : f32
    %13 = vector.broadcast %cst_8 : f32 to vector<16x1xf32>
    %14 = arith.divf %12, %13 : vector<16x1xf32>
    %cst_9 = arith.constant 9.99999974E-6 : f32
    %15 = vector.broadcast %cst_9 : f32 to vector<16x1xf32>
    %16 = arith.addf %14, %15 : vector<16x1xf32>
    %17 = math.rsqrt %16 : vector<16x1xf32>
    %18 = vector.broadcast %17 : vector<16x1xf32> to vector<16x32xf32>
    %19 = arith.mulf %9, %18 : vector<16x32xf32>
    %20 = vector.broadcast %2 : vector<1x32xf32> to vector<16x32xf32>
    %21 = arith.mulf %19, %20 : vector<16x32xf32>
    %22 = vector.broadcast %3 : vector<1x32xf32> to vector<16x32xf32>
    %23 = arith.addf %21, %22 : vector<16x32xf32>
    %24 = arith.truncf %23 : vector<16x32xf32> to vector<16x32xbf16>
    %c0_10 = arith.constant 0 : index
    %c0_11 = arith.constant 0 : index
    %25 = vector.load %arg4[%c0_10, %c0_11] : memref<32x96xbf16, #tpu.memory_space<vmem>>, vector<32x96xbf16>
    %cst_12 = arith.constant dense<0.000000e+00> : vector<16x96xf32>
    %26 = tpu.matmul %24, %25, %cst_12 {dimension_numbers = #tpu.dot_dimension_numbers<[1], [0], [0], [1], [0, 0, 1, 1], [], []>} : vector<16x32xbf16>, vector<32x96xbf16>, vector<16x96xf32> -> vector<16x96xf32>
    %c0_13 = arith.constant 0 : index
    %c0_14 = arith.constant 0 : index
    %27 = vector.load %arg5[%c0_13, %c0_14] : memref<1x96xf32, #tpu.memory_space<vmem>>, vector<1x96xf32>
    %28 = vector.broadcast %27 : vector<1x96xf32> to vector<16x96xf32>
    %29 = arith.addf %26, %28 : vector<16x96xf32>
    %30 = arith.truncf %29 : vector<16x96xf32> to vector<16x96xbf16>
    %31 = vector.extract_strided_slice %30 {offsets = [0, 0], sizes = [8, 8], strides = [1, 1]} : vector<16x96xbf16> to vector<8x8xbf16>
    %32 = vector.extract_strided_slice %30 {offsets = [0, 32], sizes = [8, 8], strides = [1, 1]} : vector<16x96xbf16> to vector<8x8xbf16>
    %33 = vector.extract_strided_slice %30 {offsets = [0, 64], sizes = [8, 8], strides = [1, 1]} : vector<16x96xbf16> to vector<8x8xbf16>
    %cst_15 = arith.constant dense<0.000000e+00> : vector<8x8xf32>
    %34 = tpu.matmul %31, %32, %cst_15 {dimension_numbers = #tpu.dot_dimension_numbers<[1], [1], [0], [0], [0, 0, 1, 0], [], []>} : vector<8x8xbf16>, vector<8x8xbf16>, vector<8x8xf32> -> vector<8x8xf32>
    %cst_16 = arith.constant dense<0xFF800000> : vector<8xf32>
    %35 = vector.multi_reduction <maximumf>, %34, %cst_16 [1] : vector<8x8xf32> to vector<8xf32>
    %36 = vector.shape_cast %35 : vector<8xf32> to vector<8x1xf32>
    %37 = vector.broadcast %36 : vector<8x1xf32> to vector<8x8xf32>
    %38 = arith.subf %34, %37 : vector<8x8xf32>
    %39 = math.exp %38 : vector<8x8xf32>
    %cst_17 = arith.constant dense<0.000000e+00> : vector<8xf32>
    %40 = vector.multi_reduction <add>, %39, %cst_17 [1] : vector<8x8xf32> to vector<8xf32>
    %41 = vector.shape_cast %40 : vector<8xf32> to vector<8x1xf32>
    %42 = tpu.reciprocal %41 {approx = true} : vector<8x1xf32> -> vector<8x1xf32>
    %43 = vector.broadcast %42 : vector<8x1xf32> to vector<8x8xf32>
    %44 = arith.mulf %39, %43 : vector<8x8xf32>
    %45 = arith.truncf %44 : vector<8x8xf32> to vector<8x8xbf16>
    %cst_18 = arith.constant dense<0.000000e+00> : vector<8x8xf32>
    %46 = tpu.matmul %45, %33, %cst_18 {dimension_numbers = #tpu.dot_dimension_numbers<[1], [0], [0], [1], [0, 0, 1, 1], [], []>} : vector<8x8xbf16>, vector<8x8xbf16>, vector<8x8xf32> -> vector<8x8xf32>
    %c0_19 = arith.constant 0 : index
    %c0_20 = arith.constant 0 : index
    %47 = vector.load %arg15[%c0_19, %c0_20] : memref<16x32xf32, #tpu.memory_space<vmem>>, vector<8x8xf32>
    tpu.vector_store %arg15[%c0_19, %c0_20], %46 {strides = array<i32>} : memref<16x32xf32, #tpu.memory_space<vmem>>, vector<8x8xf32>,
    %48 = vector.extract_strided_slice %30 {offsets = [0, 8], sizes = [8, 8], strides = [1, 1]} : vector<16x96xbf16> to vector<8x8xbf16>
    %49 = vector.extract_strided_slice %30 {offsets = [0, 40], sizes = [8, 8], strides = [1, 1]} : vector<16x96xbf16> to vector<8x8xbf16>
    %50 = vector.extract_strided_slice %30 {offsets = [0, 72], sizes = [8, 8], strides = [1, 1]} : vector<16x96xbf16> to vector<8x8xbf16>
    %cst_21 = arith.constant dense<0.000000e+00> : vector<8x8xf32>
    %51 = tpu.matmul %48, %49, %cst_21 {dimension_numbers = #tpu.dot_dimension_numbers<[1], [1], [0], [0], [0, 0, 1, 0], [], []>} : vector<8x8xbf16>, vector<8x8xbf16>, vector<8x8xf32> -> vector<8x8xf32>
    %cst_22 = arith.constant dense<0xFF800000> : vector<8xf32>
    %52 = vector.multi_reduction <maximumf>, %51, %cst_22 [1] : vector<8x8xf32> to vector<8xf32>
    %53 = vector.shape_cast %52 : vector<8xf32> to vector<8x1xf32>
    %54 = vector.broadcast %53 : vector<8x1xf32> to vector<8x8xf32>
    %55 = arith.subf %51, %54 : vector<8x8xf32>
    %56 = math.exp %55 : vector<8x8xf32>
    %cst_23 = arith.constant dense<0.000000e+00> : vector<8xf32>
    %57 = vector.multi_reduction <add>, %56, %cst_23 [1] : vector<8x8xf32> to vector<8xf32>
    %58 = vector.shape_cast %57 : vector<8xf32> to vector<8x1xf32>
    %59 = tpu.reciprocal %58 {approx = true} : vector<8x1xf32> -> vector<8x1xf32>
    %60 = vector.broadcast %59 : vector<8x1xf32> to vector<8x8xf32>
    %61 = arith.mulf %56, %60 : vector<8x8xf32>
    %62 = arith.truncf %61 : vector<8x8xf32> to vector<8x8xbf16>
    %cst_24 = arith.constant dense<0.000000e+00> : vector<8x8xf32>
    %63 = tpu.matmul %62, %50, %cst_24 {dimension_numbers = #tpu.dot_dimension_numbers<[1], [0], [0], [1], [0, 0, 1, 1], [], []>} : vector<8x8xbf16>, vector<8x8xbf16>, vector<8x8xf32> -> vector<8x8xf32>
    %c0_25 = arith.constant 0 : index
    %c8 = arith.constant 8 : index
    %64 = vector.load %arg15[%c0_25, %c8] : memref<16x32xf32, #tpu.memory_space<vmem>>, vector<8x8xf32>
    tpu.vector_store %arg15[%c0_25, %c8], %63 {strides = array<i32>} : memref<16x32xf32, #tpu.memory_space<vmem>>, vector<8x8xf32>,
    %65 = vector.extract_strided_slice %30 {offsets = [0, 16], sizes = [8, 8], strides = [1, 1]} : vector<16x96xbf16> to vector<8x8xbf16>
    %66 = vector.extract_strided_slice %30 {offsets = [0, 48], sizes = [8, 8], strides = [1, 1]} : vector<16x96xbf16> to vector<8x8xbf16>
    %67 = vector.extract_strided_slice %30 {offsets = [0, 80], sizes = [8, 8], strides = [1, 1]} : vector<16x96xbf16> to vector<8x8xbf16>
    %cst_26 = arith.constant dense<0.000000e+00> : vector<8x8xf32>
    %68 = tpu.matmul %65, %66, %cst_26 {dimension_numbers = #tpu.dot_dimension_numbers<[1], [1], [0], [0], [0, 0, 1, 0], [], []>} : vector<8x8xbf16>, vector<8x8xbf16>, vector<8x8xf32> -> vector<8x8xf32>
    %cst_27 = arith.constant dense<0xFF800000> : vector<8xf32>
    %69 = vector.multi_reduction <maximumf>, %68, %cst_27 [1] : vector<8x8xf32> to vector<8xf32>
    %70 = vector.shape_cast %69 : vector<8xf32> to vector<8x1xf32>
    %71 = vector.broadcast %70 : vector<8x1xf32> to vector<8x8xf32>
    %72 = arith.subf %68, %71 : vector<8x8xf32>
    %73 = math.exp %72 : vector<8x8xf32>
    %cst_28 = arith.constant dense<0.000000e+00> : vector<8xf32>
    %74 = vector.multi_reduction <add>, %73, %cst_28 [1] : vector<8x8xf32> to vector<8xf32>
    %75 = vector.shape_cast %74 : vector<8xf32> to vector<8x1xf32>
    %76 = tpu.reciprocal %75 {approx = true} : vector<8x1xf32> -> vector<8x1xf32>
    %77 = vector.broadcast %76 : vector<8x1xf32> to vector<8x8xf32>
    %78 = arith.mulf %73, %77 : vector<8x8xf32>
    %79 = arith.truncf %78 : vector<8x8xf32> to vector<8x8xbf16>
    %cst_29 = arith.constant dense<0.000000e+00> : vector<8x8xf32>
    %80 = tpu.matmul %79, %67, %cst_29 {dimension_numbers = #tpu.dot_dimension_numbers<[1], [0], [0], [1], [0, 0, 1, 1], [], []>} : vector<8x8xbf16>, vector<8x8xbf16>, vector<8x8xf32> -> vector<8x8xf32>
    %c0_30 = arith.constant 0 : index
    %c16 = arith.constant 16 : index
    %81 = vector.load %arg15[%c0_30, %c16] : memref<16x32xf32, #tpu.memory_space<vmem>>, vector<8x8xf32>
    tpu.vector_store %arg15[%c0_30, %c16], %80 {strides = array<i32>} : memref<16x32xf32, #tpu.memory_space<vmem>>, vector<8x8xf32>,
    %82 = vector.extract_strided_slice %30 {offsets = [0, 24], sizes = [8, 8], strides = [1, 1]} : vector<16x96xbf16> to vector<8x8xbf16>
    %83 = vector.extract_strided_slice %30 {offsets = [0, 56], sizes = [8, 8], strides = [1, 1]} : vector<16x96xbf16> to vector<8x8xbf16>
    %84 = vector.extract_strided_slice %30 {offsets = [0, 88], sizes = [8, 8], strides = [1, 1]} : vector<16x96xbf16> to vector<8x8xbf16>
    %cst_31 = arith.constant dense<0.000000e+00> : vector<8x8xf32>
    %85 = tpu.matmul %82, %83, %cst_31 {dimension_numbers = #tpu.dot_dimension_numbers<[1], [1], [0], [0], [0, 0, 1, 0], [], []>} : vector<8x8xbf16>, vector<8x8xbf16>, vector<8x8xf32> -> vector<8x8xf32>
    %cst_32 = arith.constant dense<0xFF800000> : vector<8xf32>
    %86 = vector.multi_reduction <maximumf>, %85, %cst_32 [1] : vector<8x8xf32> to vector<8xf32>
    %87 = vector.shape_cast %86 : vector<8xf32> to vector<8x1xf32>
    %88 = vector.broadcast %87 : vector<8x1xf32> to vector<8x8xf32>
    %89 = arith.subf %85, %88 : vector<8x8xf32>
    %90 = math.exp %89 : vector<8x8xf32>
    %cst_33 = arith.constant dense<0.000000e+00> : vector<8xf32>
    %91 = vector.multi_reduction <add>, %90, %cst_33 [1] : vector<8x8xf32> to vector<8xf32>
    %92 = vector.shape_cast %91 : vector<8xf32> to vector<8x1xf32>
    %93 = tpu.reciprocal %92 {approx = true} : vector<8x1xf32> -> vector<8x1xf32>
    %94 = vector.broadcast %93 : vector<8x1xf32> to vector<8x8xf32>
    %95 = arith.mulf %90, %94 : vector<8x8xf32>
    %96 = arith.truncf %95 : vector<8x8xf32> to vector<8x8xbf16>
    %cst_34 = arith.constant dense<0.000000e+00> : vector<8x8xf32>
    %97 = tpu.matmul %96, %84, %cst_34 {dimension_numbers = #tpu.dot_dimension_numbers<[1], [0], [0], [1], [0, 0, 1, 1], [], []>} : vector<8x8xbf16>, vector<8x8xbf16>, vector<8x8xf32> -> vector<8x8xf32>
    %c0_35 = arith.constant 0 : index
    %c24 = arith.constant 24 : index
    %98 = vector.load %arg15[%c0_35, %c24] : memref<16x32xf32, #tpu.memory_space<vmem>>, vector<8x8xf32>
    tpu.vector_store %arg15[%c0_35, %c24], %97 {strides = array<i32>} : memref<16x32xf32, #tpu.memory_space<vmem>>, vector<8x8xf32>,
    %99 = vector.extract_strided_slice %30 {offsets = [8, 0], sizes = [8, 8], strides = [1, 1]} : vector<16x96xbf16> to vector<8x8xbf16>
    %100 = vector.extract_strided_slice %30 {offsets = [8, 32], sizes = [8, 8], strides = [1, 1]} : vector<16x96xbf16> to vector<8x8xbf16>
    %101 = vector.extract_strided_slice %30 {offsets = [8, 64], sizes = [8, 8], strides = [1, 1]} : vector<16x96xbf16> to vector<8x8xbf16>
    %cst_36 = arith.constant dense<0.000000e+00> : vector<8x8xf32>
    %102 = tpu.matmul %99, %100, %cst_36 {dimension_numbers = #tpu.dot_dimension_numbers<[1], [1], [0], [0], [0, 0, 1, 0], [], []>} : vector<8x8xbf16>, vector<8x8xbf16>, vector<8x8xf32> -> vector<8x8xf32>
    %cst_37 = arith.constant dense<0xFF800000> : vector<8xf32>
    %103 = vector.multi_reduction <maximumf>, %102, %cst_37 [1] : vector<8x8xf32> to vector<8xf32>
    %104 = vector.shape_cast %103 : vector<8xf32> to vector<8x1xf32>
    %105 = vector.broadcast %104 : vector<8x1xf32> to vector<8x8xf32>
    %106 = arith.subf %102, %105 : vector<8x8xf32>
    %107 = math.exp %106 : vector<8x8xf32>
    %cst_38 = arith.constant dense<0.000000e+00> : vector<8xf32>
    %108 = vector.multi_reduction <add>, %107, %cst_38 [1] : vector<8x8xf32> to vector<8xf32>
    %109 = vector.shape_cast %108 : vector<8xf32> to vector<8x1xf32>
    %110 = tpu.reciprocal %109 {approx = true} : vector<8x1xf32> -> vector<8x1xf32>
    %111 = vector.broadcast %110 : vector<8x1xf32> to vector<8x8xf32>
    %112 = arith.mulf %107, %111 : vector<8x8xf32>
    %113 = arith.truncf %112 : vector<8x8xf32> to vector<8x8xbf16>
    %cst_39 = arith.constant dense<0.000000e+00> : vector<8x8xf32>
    %114 = tpu.matmul %113, %101, %cst_39 {dimension_numbers = #tpu.dot_dimension_numbers<[1], [0], [0], [1], [0, 0, 1, 1], [], []>} : vector<8x8xbf16>, vector<8x8xbf16>, vector<8x8xf32> -> vector<8x8xf32>
    %c8_40 = arith.constant 8 : index
    %c0_41 = arith.constant 0 : index
    %115 = vector.load %arg15[%c8_40, %c0_41] : memref<16x32xf32, #tpu.memory_space<vmem>>, vector<8x8xf32>
    tpu.vector_store %arg15[%c8_40, %c0_41], %114 {strides = array<i32>} : memref<16x32xf32, #tpu.memory_space<vmem>>, vector<8x8xf32>,
    %116 = vector.extract_strided_slice %30 {offsets = [8, 8], sizes = [8, 8], strides = [1, 1]} : vector<16x96xbf16> to vector<8x8xbf16>
    %117 = vector.extract_strided_slice %30 {offsets = [8, 40], sizes = [8, 8], strides = [1, 1]} : vector<16x96xbf16> to vector<8x8xbf16>
    %118 = vector.extract_strided_slice %30 {offsets = [8, 72], sizes = [8, 8], strides = [1, 1]} : vector<16x96xbf16> to vector<8x8xbf16>
    %cst_42 = arith.constant dense<0.000000e+00> : vector<8x8xf32>
    %119 = tpu.matmul %116, %117, %cst_42 {dimension_numbers = #tpu.dot_dimension_numbers<[1], [1], [0], [0], [0, 0, 1, 0], [], []>} : vector<8x8xbf16>, vector<8x8xbf16>, vector<8x8xf32> -> vector<8x8xf32>
    %cst_43 = arith.constant dense<0xFF800000> : vector<8xf32>
    %120 = vector.multi_reduction <maximumf>, %119, %cst_43 [1] : vector<8x8xf32> to vector<8xf32>
    %121 = vector.shape_cast %120 : vector<8xf32> to vector<8x1xf32>
    %122 = vector.broadcast %121 : vector<8x1xf32> to vector<8x8xf32>
    %123 = arith.subf %119, %122 : vector<8x8xf32>
    %124 = math.exp %123 : vector<8x8xf32>
    %cst_44 = arith.constant dense<0.000000e+00> : vector<8xf32>
    %125 = vector.multi_reduction <add>, %124, %cst_44 [1] : vector<8x8xf32> to vector<8xf32>
    %126 = vector.shape_cast %125 : vector<8xf32> to vector<8x1xf32>
    %127 = tpu.reciprocal %126 {approx = true} : vector<8x1xf32> -> vector<8x1xf32>
    %128 = vector.broadcast %127 : vector<8x1xf32> to vector<8x8xf32>
    %129 = arith.mulf %124, %128 : vector<8x8xf32>
    %130 = arith.truncf %129 : vector<8x8xf32> to vector<8x8xbf16>
    %cst_45 = arith.constant dense<0.000000e+00> : vector<8x8xf32>
    %131 = tpu.matmul %130, %118, %cst_45 {dimension_numbers = #tpu.dot_dimension_numbers<[1], [0], [0], [1], [0, 0, 1, 1], [], []>} : vector<8x8xbf16>, vector<8x8xbf16>, vector<8x8xf32> -> vector<8x8xf32>
    %c8_46 = arith.constant 8 : index
    %c8_47 = arith.constant 8 : index
    %132 = vector.load %arg15[%c8_46, %c8_47] : memref<16x32xf32, #tpu.memory_space<vmem>>, vector<8x8xf32>
    tpu.vector_store %arg15[%c8_46, %c8_47], %131 {strides = array<i32>} : memref<16x32xf32, #tpu.memory_space<vmem>>, vector<8x8xf32>,
    %133 = vector.extract_strided_slice %30 {offsets = [8, 16], sizes = [8, 8], strides = [1, 1]} : vector<16x96xbf16> to vector<8x8xbf16>
    %134 = vector.extract_strided_slice %30 {offsets = [8, 48], sizes = [8, 8], strides = [1, 1]} : vector<16x96xbf16> to vector<8x8xbf16>
    %135 = vector.extract_strided_slice %30 {offsets = [8, 80], sizes = [8, 8], strides = [1, 1]} : vector<16x96xbf16> to vector<8x8xbf16>
    %cst_48 = arith.constant dense<0.000000e+00> : vector<8x8xf32>
    %136 = tpu.matmul %133, %134, %cst_48 {dimension_numbers = #tpu.dot_dimension_numbers<[1], [1], [0], [0], [0, 0, 1, 0], [], []>} : vector<8x8xbf16>, vector<8x8xbf16>, vector<8x8xf32> -> vector<8x8xf32>
    %cst_49 = arith.constant dense<0xFF800000> : vector<8xf32>
    %137 = vector.multi_reduction <maximumf>, %136, %cst_49 [1] : vector<8x8xf32> to vector<8xf32>
    %138 = vector.shape_cast %137 : vector<8xf32> to vector<8x1xf32>
    %139 = vector.broadcast %138 : vector<8x1xf32> to vector<8x8xf32>
    %140 = arith.subf %136, %139 : vector<8x8xf32>
    %141 = math.exp %140 : vector<8x8xf32>
    %cst_50 = arith.constant dense<0.000000e+00> : vector<8xf32>
    %142 = vector.multi_reduction <add>, %141, %cst_50 [1] : vector<8x8xf32> to vector<8xf32>
    %143 = vector.shape_cast %142 : vector<8xf32> to vector<8x1xf32>
    %144 = tpu.reciprocal %143 {approx = true} : vector<8x1xf32> -> vector<8x1xf32>
    %145 = vector.broadcast %144 : vector<8x1xf32> to vector<8x8xf32>
    %146 = arith.mulf %141, %145 : vector<8x8xf32>
    %147 = arith.truncf %146 : vector<8x8xf32> to vector<8x8xbf16>
    %cst_51 = arith.constant dense<0.000000e+00> : vector<8x8xf32>
    %148 = tpu.matmul %147, %135, %cst_51 {dimension_numbers = #tpu.dot_dimension_numbers<[1], [0], [0], [1], [0, 0, 1, 1], [], []>} : vector<8x8xbf16>, vector<8x8xbf16>, vector<8x8xf32> -> vector<8x8xf32>
    %c8_52 = arith.constant 8 : index
    %c16_53 = arith.constant 16 : index
    %149 = vector.load %arg15[%c8_52, %c16_53] : memref<16x32xf32, #tpu.memory_space<vmem>>, vector<8x8xf32>
    tpu.vector_store %arg15[%c8_52, %c16_53], %148 {strides = array<i32>} : memref<16x32xf32, #tpu.memory_space<vmem>>, vector<8x8xf32>,
    %150 = vector.extract_strided_slice %30 {offsets = [8, 24], sizes = [8, 8], strides = [1, 1]} : vector<16x96xbf16> to vector<8x8xbf16>
    %151 = vector.extract_strided_slice %30 {offsets = [8, 56], sizes = [8, 8], strides = [1, 1]} : vector<16x96xbf16> to vector<8x8xbf16>
    %152 = vector.extract_strided_slice %30 {offsets = [8, 88], sizes = [8, 8], strides = [1, 1]} : vector<16x96xbf16> to vector<8x8xbf16>
    %cst_54 = arith.constant dense<0.000000e+00> : vector<8x8xf32>
    %153 = tpu.matmul %150, %151, %cst_54 {dimension_numbers = #tpu.dot_dimension_numbers<[1], [1], [0], [0], [0, 0, 1, 0], [], []>} : vector<8x8xbf16>, vector<8x8xbf16>, vector<8x8xf32> -> vector<8x8xf32>
    %cst_55 = arith.constant dense<0xFF800000> : vector<8xf32>
    %154 = vector.multi_reduction <maximumf>, %153, %cst_55 [1] : vector<8x8xf32> to vector<8xf32>
    %155 = vector.shape_cast %154 : vector<8xf32> to vector<8x1xf32>
    %156 = vector.broadcast %155 : vector<8x1xf32> to vector<8x8xf32>
    %157 = arith.subf %153, %156 : vector<8x8xf32>
    %158 = math.exp %157 : vector<8x8xf32>
    %cst_56 = arith.constant dense<0.000000e+00> : vector<8xf32>
    %159 = vector.multi_reduction <add>, %158, %cst_56 [1] : vector<8x8xf32> to vector<8xf32>
    %160 = vector.shape_cast %159 : vector<8xf32> to vector<8x1xf32>
    %161 = tpu.reciprocal %160 {approx = true} : vector<8x1xf32> -> vector<8x1xf32>
    %162 = vector.broadcast %161 : vector<8x1xf32> to vector<8x8xf32>
    %163 = arith.mulf %158, %162 : vector<8x8xf32>
    %164 = arith.truncf %163 : vector<8x8xf32> to vector<8x8xbf16>
    %cst_57 = arith.constant dense<0.000000e+00> : vector<8x8xf32>
    %165 = tpu.matmul %164, %152, %cst_57 {dimension_numbers = #tpu.dot_dimension_numbers<[1], [0], [0], [1], [0, 0, 1, 1], [], []>} : vector<8x8xbf16>, vector<8x8xbf16>, vector<8x8xf32> -> vector<8x8xf32>
    %c8_58 = arith.constant 8 : index
    %c24_59 = arith.constant 24 : index
    %166 = vector.load %arg15[%c8_58, %c24_59] : memref<16x32xf32, #tpu.memory_space<vmem>>, vector<8x8xf32>
    tpu.vector_store %arg15[%c8_58, %c24_59], %165 {strides = array<i32>} : memref<16x32xf32, #tpu.memory_space<vmem>>, vector<8x8xf32>,
    %c0_60 = arith.constant 0 : index
    %c0_61 = arith.constant 0 : index
    %167 = vector.load %arg15[%c0_60, %c0_61] : memref<16x32xf32, #tpu.memory_space<vmem>>, vector<16x32xf32>
    %168 = arith.truncf %167 : vector<16x32xf32> to vector<16x32xbf16>
    %c0_62 = arith.constant 0 : index
    %c0_63 = arith.constant 0 : index
    %169 = vector.load %arg6[%c0_62, %c0_63] : memref<32x32xbf16, #tpu.memory_space<vmem>>, vector<32x32xbf16>
    %cst_64 = arith.constant dense<0.000000e+00> : vector<16x32xf32>
    %170 = tpu.matmul %168, %169, %cst_64 {dimension_numbers = #tpu.dot_dimension_numbers<[1], [0], [0], [1], [0, 0, 1, 1], [], []>} : vector<16x32xbf16>, vector<32x32xbf16>, vector<16x32xf32> -> vector<16x32xf32>
    %171 = arith.addf %1, %170 : vector<16x32xf32>
    %c0_65 = arith.constant 0 : index
    %c0_66 = arith.constant 0 : index
    %172 = vector.load %arg7[%c0_65, %c0_66] : memref<1x32xf32, #tpu.memory_space<vmem>>, vector<1x32xf32>
    %173 = vector.broadcast %172 : vector<1x32xf32> to vector<16x32xf32>
    %174 = arith.addf %171, %173 : vector<16x32xf32>
    %c0_67 = arith.constant 0 : index
    %c0_68 = arith.constant 0 : index
    %175 = vector.load %arg8[%c0_67, %c0_68] : memref<1x32xf32, #tpu.memory_space<vmem>>, vector<1x32xf32>
    %c0_69 = arith.constant 0 : index
    %c0_70 = arith.constant 0 : index
    %176 = vector.load %arg9[%c0_69, %c0_70] : memref<1x32xf32, #tpu.memory_space<vmem>>, vector<1x32xf32>
    %cst_71 = arith.constant dense<0.000000e+00> : vector<16xf32>
    %177 = vector.multi_reduction <add>, %174, %cst_71 [1] : vector<16x32xf32> to vector<16xf32>
    %178 = vector.shape_cast %177 : vector<16xf32> to vector<16x1xf32>
    %cst_72 = arith.constant 3.200000e+01 : f32
    %179 = vector.broadcast %cst_72 : f32 to vector<16x1xf32>
    %180 = arith.divf %178, %179 : vector<16x1xf32>
    %181 = vector.broadcast %180 : vector<16x1xf32> to vector<16x32xf32>
    %182 = arith.subf %174, %181 : vector<16x32xf32>
    %183 = arith.mulf %182, %182 : vector<16x32xf32>
    %cst_73 = arith.constant dense<0.000000e+00> : vector<16xf32>
    %184 = vector.multi_reduction <add>, %183, %cst_73 [1] : vector<16x32xf32> to vector<16xf32>
    %185 = vector.shape_cast %184 : vector<16xf32> to vector<16x1xf32>
    %cst_74 = arith.constant 3.200000e+01 : f32
    %186 = vector.broadcast %cst_74 : f32 to vector<16x1xf32>
    %187 = arith.divf %185, %186 : vector<16x1xf32>
    %cst_75 = arith.constant 9.99999974E-6 : f32
    %188 = vector.broadcast %cst_75 : f32 to vector<16x1xf32>
    %189 = arith.addf %187, %188 : vector<16x1xf32>
    %190 = math.rsqrt %189 : vector<16x1xf32>
    %191 = vector.broadcast %190 : vector<16x1xf32> to vector<16x32xf32>
    %192 = arith.mulf %182, %191 : vector<16x32xf32>
    %193 = vector.broadcast %175 : vector<1x32xf32> to vector<16x32xf32>
    %194 = arith.mulf %192, %193 : vector<16x32xf32>
    %195 = vector.broadcast %176 : vector<1x32xf32> to vector<16x32xf32>
    %196 = arith.addf %194, %195 : vector<16x32xf32>
    %197 = arith.truncf %196 : vector<16x32xf32> to vector<16x32xbf16>
    %c0_76 = arith.constant 0 : index
    %c0_77 = arith.constant 0 : index
    %198 = vector.load %arg10[%c0_76, %c0_77] : memref<32x128xbf16, #tpu.memory_space<vmem>>, vector<32x128xbf16>
    %cst_78 = arith.constant dense<0.000000e+00> : vector<16x128xf32>
    %199 = tpu.matmul %197, %198, %cst_78 {dimension_numbers = #tpu.dot_dimension_numbers<[1], [0], [0], [1], [0, 0, 1, 1], [], []>} : vector<16x32xbf16>, vector<32x128xbf16>, vector<16x128xf32> -> vector<16x128xf32>
    %c0_79 = arith.constant 0 : index
    %c0_80 = arith.constant 0 : index
    %200 = vector.load %arg11[%c0_79, %c0_80] : memref<1x128xf32, #tpu.memory_space<vmem>>, vector<1x128xf32>
    %201 = vector.broadcast %200 : vector<1x128xf32> to vector<16x128xf32>
    %202 = arith.addf %199, %201 : vector<16x128xf32>
    %cst_81 = arith.constant 1.702000e+00 : f32
    %203 = vector.broadcast %cst_81 : f32 to vector<16x128xf32>
    %204 = arith.mulf %203, %202 : vector<16x128xf32>
    %205 = arith.negf %204 : vector<16x128xf32>
    %206 = math.exp %205 : vector<16x128xf32>
    %cst_82 = arith.constant 1.000000e+00 : f32
    %207 = vector.broadcast %cst_82 : f32 to vector<16x128xf32>
    %208 = arith.addf %207, %206 : vector<16x128xf32>
    %209 = arith.divf %207, %208 : vector<16x128xf32>
    %210 = arith.mulf %202, %209 : vector<16x128xf32>
    %211 = arith.truncf %210 : vector<16x128xf32> to vector<16x128xbf16>
    %c0_83 = arith.constant 0 : index
    %c0_84 = arith.constant 0 : index
    %212 = vector.load %arg12[%c0_83, %c0_84] : memref<128x32xbf16, #tpu.memory_space<vmem>>, vector<128x32xbf16>
    %cst_85 = arith.constant dense<0.000000e+00> : vector<16x32xf32>
    %213 = tpu.matmul %211, %212, %cst_85 {dimension_numbers = #tpu.dot_dimension_numbers<[1], [0], [0], [1], [0, 0, 1, 1], [], []>} : vector<16x128xbf16>, vector<128x32xbf16>, vector<16x32xf32> -> vector<16x32xf32>
    %c0_86 = arith.constant 0 : index
    %c0_87 = arith.constant 0 : index
    %214 = vector.load %arg13[%c0_86, %c0_87] : memref<1x32xf32, #tpu.memory_space<vmem>>, vector<1x32xf32>
    %215 = vector.broadcast %214 : vector<1x32xf32> to vector<16x32xf32>
    %216 = arith.addf %213, %215 : vector<16x32xf32>
    %217 = arith.addf %174, %216 : vector<16x32xf32>
    %218 = vector.shape_cast %217 : vector<16x32xf32> to vector<2x8x32xf32>
    %c0_88 = arith.constant 0 : index
    %c0_89 = arith.constant 0 : index
    %c0_90 = arith.constant 0 : index
    %219 = vector.load %arg14[%c0_88, %c0_89, %c0_90] : memref<2x8x32xf32, #tpu.memory_space<vmem>>, vector<2x8x32xf32>
    tpu.vector_store %arg14[%c0_88, %c0_89, %c0_90], %218 {strides = array<i32>} : memref<2x8x32xf32, #tpu.memory_space<vmem>>, vector<2x8x32xf32>,
    return
  }
  func.func @transform_0(%arg0: i32) -> (i32, i32, i32) {
    %c0_i32 = arith.constant 0 : i32
    %c0_i32_0 = arith.constant 0 : i32
    %c0_i32_1 = arith.constant 0 : i32
    return %arg0, %c0_i32, %c0_i32_0 : i32, i32, i32
  }
  func.func @transform_1(%arg0: i32) -> (i32, i32) {
    %c0_i32 = arith.constant 0 : i32
    %c0_i32_0 = arith.constant 0 : i32
    %c0_i32_1 = arith.constant 0 : i32
    return %c0_i32, %c0_i32_0 : i32, i32
  }
  func.func @transform_2(%arg0: i32) -> (i32, i32) {
    %c0_i32 = arith.constant 0 : i32
    %c0_i32_0 = arith.constant 0 : i32
    %c0_i32_1 = arith.constant 0 : i32
    return %c0_i32, %c0_i32_0 : i32, i32
  }
  func.func @transform_3(%arg0: i32) -> (i32, i32) {
    %c0_i32 = arith.constant 0 : i32
    %c0_i32_0 = arith.constant 0 : i32
    %c0_i32_1 = arith.constant 0 : i32
    return %c0_i32, %c0_i32_0 : i32, i32
  }
  func.func @transform_4(%arg0: i32) -> (i32, i32) {
    %c0_i32 = arith.constant 0 : i32
    %c0_i32_0 = arith.constant 0 : i32
    %c0_i32_1 = arith.constant 0 : i32
    return %c0_i32, %c0_i32_0 : i32, i32
  }
  func.func @transform_5(%arg0: i32) -> (i32, i32) {
    %c0_i32 = arith.constant 0 : i32
    %c0_i32_0 = arith.constant 0 : i32
    %c0_i32_1 = arith.constant 0 : i32
    return %c0_i32, %c0_i32_0 : i32, i32
  }
  func.func @transform_6(%arg0: i32) -> (i32, i32) {
    %c0_i32 = arith.constant 0 : i32
    %c0_i32_0 = arith.constant 0 : i32
    %c0_i32_1 = arith.constant 0 : i32
    return %c0_i32, %c0_i32_0 : i32, i32
  }
  func.func @transform_7(%arg0: i32) -> (i32, i32) {
    %c0_i32 = arith.constant 0 : i32
    %c0_i32_0 = arith.constant 0 : i32
    %c0_i32_1 = arith.constant 0 : i32
    return %c0_i32, %c0_i32_0 : i32, i32
  }
  func.func @transform_8(%arg0: i32) -> (i32, i32) {
    %c0_i32 = arith.constant 0 : i32
    %c0_i32_0 = arith.constant 0 : i32
    %c0_i32_1 = arith.constant 0 : i32
    return %c0_i32, %c0_i32_0 : i32, i32
  }
  func.func @transform_9(%arg0: i32) -> (i32, i32) {
    %c0_i32 = arith.constant 0 : i32
    %c0_i32_0 = arith.constant 0 : i32
    %c0_i32_1 = arith.constant 0 : i32
    return %c0_i32, %c0_i32_0 : i32, i32
  }
  func.func @transform_10(%arg0: i32) -> (i32, i32) {
    %c0_i32 = arith.constant 0 : i32
    %c0_i32_0 = arith.constant 0 : i32
    %c0_i32_1 = arith.constant 0 : i32
    return %c0_i32, %c0_i32_0 : i32, i32
  }
  func.func @transform_11(%arg0: i32) -> (i32, i32) {
    %c0_i32 = arith.constant 0 : i32
    %c0_i32_0 = arith.constant 0 : i32
    %c0_i32_1 = arith.constant 0 : i32
    return %c0_i32, %c0_i32_0 : i32, i32
  }
  func.func @transform_12(%arg0: i32) -> (i32, i32) {
    %c0_i32 = arith.constant 0 : i32
    %c0_i32_0 = arith.constant 0 : i32
    %c0_i32_1 = arith.constant 0 : i32
    return %c0_i32, %c0_i32_0 : i32, i32
  }
  func.func @transform_13(%arg0: i32) -> (i32, i32, i32) {
    %c0_i32 = arith.constant 0 : i32
    %c0_i32_0 = arith.constant 0 : i32
    %c0_i32_1 = arith.constant 0 : i32
    return %arg0, %c0_i32, %c0_i32_0 : i32, i32, i32
  }
}

</mosaic_0001>

<bundles_post_ra>
// kernel: tpu_custom_call.1
= control target key start
LH: loop header
LB: loop body
LE: loop exit
PB: predicated region body
PF: predicated region fallthrough
CT: control target
= control target key end

     0   :  { %s2792_s0 = inlined_call_operand.vmem [shape: f32[4,8,32], index: 0, kind: input, shape index: {}]   ;;  %s2793_s1 = inlined_call_operand.vmem [shape: f32[1,32], index: 1, kind: input, shape index: {}]   ;;  %s2794_s2 = inlined_call_operand.vmem [shape: f32[1,32], index: 2, kind: input, shape index: {}]   ;;  %s2795_s3 = inlined_call_operand.vmem [shape: bf16[32,96], index: 3, kind: input, shape index: {}]   ;;  %s2796_s4 = inlined_call_operand.vmem [shape: f32[1,96], index: 4, kind: input, shape index: {}]   ;;  %s2797_s5 = inlined_call_operand.vmem [shape: bf16[32,32], index: 5, kind: input, shape index: {}]   ;;  %s2798_s6 = inlined_call_operand.vmem [shape: f32[1,32], index: 6, kind: input, shape index: {}]   ;;  %s2799_s7 = inlined_call_operand.vmem [shape: f32[1,32], index: 7, kind: input, shape index: {}]   ;;  %s2800_s8 = inlined_call_operand.vmem [shape: f32[1,32], index: 8, kind: input, shape index: {}]   ;;  %s2801_s9 = inlined_call_operand.vmem [shape: bf16[32,128], index: 9, kind: input, shape index: {}]   ;;  %s2802_s10 = inlined_call_operand.vmem [shape: f32[1,128], index: 10, kind: input, shape index: {}]   ;;  %s2803_s11 = inlined_call_operand.vmem [shape: bf16[128,32], index: 11, kind: input, shape index: {}]   ;;  %s2804_s12 = inlined_call_operand.vmem [shape: f32[1,32], index: 12, kind: input, shape index: {}]   ;;  %s2805_s13 = inlined_call_operand.hbm [shape: f32[4,8,32], index: 13, kind: output, shape index: {}]  }
   0x1   :  { %2807 = sst [smem:[#allocation6_spill]] %s2792_s0 }
   0x2   :  { %2808 = sst [smem:[#allocation7_spill]] %s2793_s1 }
   0x3   :  { %2809 = sst [smem:[#allocation8_spill]] %s2794_s2 }
   0x4   :  { %18 = vsyncpa [#allocation4], 0 }
   0x5   :  { %20 = vsyncpa [#allocation4 + $0x1], 0  ;;  %s2386_s25 = smov 0   ;;  %s2388_s26 = smov 0  }
   0x6   :  { %s2390_s27 = smov 0   ;;  %s2392_s28 = smov 0  }
   0x7 LB: > { %s2407_s29 = sadd.s32 4294967295, %s2296_s28   ;;  %s1870_s30 = sadd.s32 4294967294, %s2296_s28   ;;  %s2296_s28 = sphi %s2392_s28, %s2819_s28   ;;  %s2292_s27 = sphi %s2390_s27, %s2818_s27   ;;  %s2288_s26 = sphi %s2388_s26, %s2817_s26   ;;  %s2284_s25 = sphi %s2386_s25, %s2816_s25  }
   0x8   : > { %s2411_s14 = sadd.s32 1, %s2296_s28   ;;  %s311_s15 = sadd.s32 1, %s2292_s27 }
   0x9   : > { %s308_s16 = ssub.s32 %s2296_s28, %s2411_s14  ;;  %p321_p0 = scmp.ne.s32.totalorder %s2292_s27, %s2288_s26 }
   0xa   : > { %p309_p1 = scmp.eq.s32.totalorder %s308_s16, 0  ;;  %p322_p2 = scmp.eq.s32.totalorder %s2407_s29, 1 }
   0xb   : > { %p327_p3 = scmp.ne.s32.totalorder %s2288_s26, %s2284_s25  ;;  %p328_p4 = scmp.eq.s32.totalorder %s1870_s30, 1 }
   0xc   : > { %s2422_s17 = scalar_select %p309_p1, %s2292_s27, %s311_s15  }
   0xd   : > { %p2424_p5 = por %p322_p2, %p321_p0  ;;  %p2428_p6 = por %p328_p4, %p327_p3 }
   0xe   : > { %p1873_p7 = scmp.ge.s32.totalorder %s2296_s28, 1  ;;  %p391_p8 = scmp.lt.s32.totalorder %s2296_s28, 3 }
  0x10   : > { %p392_p9 = pnand %p1873_p7, %p391_p8 }
  0x11   : > { %s1875_s20 = sshll.u32 (!%p392_p9), %s2407_s29, 1  ;;  %vm447_vm0 = vcmask (!%p392_p9), 261120   ;;  %s2812_s0 = sld [smem:[#allocation6_spill]] (!%p392_p9)  ;;  %v2172_v14 = vld [vmem:[%s2795_s3] sm:$0xff] (!%p392_p9)   ;;  %v2298_v15 = vmov (!%p392_p9), 0.0   ;;  %v2173_v16 = vld [vmem:[%s2795_s3 + $0x8] sm:$0xff] (!%p392_p9)  }
  0x12   : > { %395 = sbr.rel (%p392_p9) target bundleno = 2688 (0xa80), region = 72  ;;  %p436_p10 = scmp.lt.s32.totalorder (!%p392_p9), %s1875_s20, 3  ;;  %1976 = vmatprep.subr.bf16.mxu0 (!%p392_p9), %v2298_v15  ;;  %1996 = vmatprep.subr.bf16.mxu1 (!%p392_p9), %v2298_v15  ;;  %vm2299_vm1 = vmmov (!%p392_p9), 0   ;;  %v1879_v34 = vld [vmem:[%s2796_s4] ss:$0 sm:$0xff] (!%p392_p9)  ;;  %vm563_vm2 = vcmask (!%p392_p9), 64512  }
  0x13   : > { %1977 = vmatpush3.bf16.msra.mxu0 (!%p392_p9), %v2172_v14  ;;  %1980 = vmatprep.mubr.msk.bf16.mxu0 (!%p392_p9), %vm2299_vm1, %v2298_v15  ;;  %s2813_s1 = sld [smem:[#allocation7_spill]] (!%p392_p9)  ;;  %s2814_s2 = sld [smem:[#allocation8_spill]] (!%p392_p9)  ;;  %vm627_vm3 = vcmask (!%p392_p9), 1043456   ;;  %vm786_vm4 = vcmask (!%p392_p9), 130112   ;;  %vm902_vm5 = vcmask (!%p392_p9), 195712   ;;  %vm1018_vm6 = vcmask (!%p392_p9), 261312  }
  0x14   : > { %1978 = vmatprep.subr.bf16.mxu0 (!%p392_p9), %v2298_v15  ;;  %1998 = vmatprep.mubr.msk.bf16.mxu1 (!%p392_p9), %vm2299_vm1, %v2298_v15  ;;  %s2300_s16 = smov (!%p392_p9), 88   ;;  %s2303_s22 = smov (!%p392_p9), 112  }
  0x15   : > { %s2304_s23 = smov (!%p392_p9), 80   ;;  %s2306_s30 = smov (!%p392_p9), 72  }
  0x16   : > { %s2307_s15 = smov (!%p392_p9), 56  }
  0x17   : > { %1979 = vmatpush3.bf16.msra.mxu0 (!%p392_p9), %v2173_v16 }
  0x18   : > { %1984 = vmatprep.subr.bf16.mxu0 (!%p392_p9), %v2298_v15 }
  0x19   : > { %s2821_s20 = smov (!%p436_p10, %s1875_s20), 3  ;;  %v1877_v25 = vld [vmem:[%s2813_s1] ss:$0 sm:$0xff] }
  0x1a   : > { %s1876_s21 = sshll.u32 %s2821_s20, 3  ;;  %v1878_v29 = vld [vmem:[%s2814_s2] ss:$0 sm:$0xff]  ;;  %s2301_s20 = smov 96  }
  0x1b   : > { %s439_s24 = scalar_lea.vmem %s2812_s0, %s1876_s21  ;;  %s2302_s21 = smov 120  }
  0x1c   : > { %v2438_v0 = vld [vmem:[%s439_s24] sm:$0xff]  ;;  %v2440_v1 = vld [vmem:[%s439_s24 + $0x8] sm:$0xff]  ;;  %s2305_s24 = smov 104   ;;  %s2314_s0 = smov [#allocation3]  }
  0x1d   : > { %v448_v2 = vsel %vm447_vm0, %v2438_v0, 0.0  ;;  %v451_v3 = vsel %vm447_vm0, %v2440_v1, 0.0  ;;  %s2238_s1 = sshll.u32 %s2314_s0, 4  ;;  %s2239_s1 = int_to_ptr.vmem [resolvable:$false] %s2238_s1 }
  0x1e   : > { %449 = vadd.xlane.f32.xlu0 %v448_v2  ;;  %s2240_s2 = scalar_lea.vmem %s2239_s1, 512 }
  0x22   : > { %452 = vadd.xlane.f32.xlu0 %v451_v3 }
  0xab   : > { %v450_v4 = vpop.xlane.xlu0 %449 }
  0xac   : > { %v455_v5 = vmul.f32 0.03125, %v450_v4 }
  0xae   : > { %v457_v6 = vsub.f32 %v2438_v0, %v455_v5 }
  0xaf   : > { %v453_v7 = vpop.xlane.xlu0 %452 }
  0xb0   : > { %v456_v8 = vmul.f32 0.03125, %v453_v7  ;;  %v459_v9 = vmul.f32 %v457_v6, %v457_v6 }
  0xb2   : > { %v458_v10 = vsub.f32 %v2440_v1, %v456_v8  ;;  %v461_v11 = vsel %vm447_vm0, %v459_v9, 0.0 }
  0xb3   : > { %462 = vadd.xlane.f32.xlu1 %v461_v11 }
  0xb4   : > { %v460_v12 = vmul.f32 %v458_v10, %v458_v10 }
  0xb6   : > { %v464_v13 = vsel %vm447_vm0, %v460_v12, 0.0 }
  0xb7   : > { %465 = vadd.xlane.f32.xlu1 %v464_v13 }
 0x140   : > { %v463_v17 = vpop.xlane.xlu1 %462 }
 0x141   : > { %v467_v18 = vmul.f32 0.03125, %v463_v17 }
 0x143   : > { %v469_v19 = vadd.f32 1e-05, %v467_v18 }
 0x144   : > { %v466_v20 = vpop.xlane.xlu1 %465 }
 0x145   : > { %2186 = vrsqrt.f32 %v469_v19  ;;  %v468_v21 = vmul.f32 0.03125, %v466_v20 }
 0x147   : > { %v470_v22 = vadd.f32 1e-05, %v468_v21 }
 0x149   : > { %2188 = vrsqrt.f32 %v470_v22 }
 0x14f   : > { %v2187_v23 = vpop.eup %2186 }
 0x150   : > { %v473_v24 = vmul.f32 %v2187_v23, %v457_v6 }
 0x152   : > { %v481_v28 = vmul.f32 %v1877_v25, %v473_v24 }
 0x153   : > { %v2189_v26 = vpop.eup %2188 }
 0x154   : > { %v474_v27 = vmul.f32 %v2189_v26, %v458_v10  ;;  %v489_v31 = vadd.f32 %v1878_v29, %v481_v28 }
 0x156   : > { %v482_v30 = vmul.f32 %v1877_v25, %v474_v27 }
 0x158   : > { %v490_v32 = vadd.f32 %v1878_v29, %v482_v30 }
 0x15a   : > { %v491_v33 = vpack.c.bf16 %v490_v32, %v489_v31 }
 0x15c   : > { %1981 = vmatmul.mubr.msk.bf16.vlgmr.msra.gmra.mrb[0].mxu0 %vm447_vm0, %v491_v33 }
 0x15d   : > { %1986 = vmatprep.mubr.msk.bf16.mxu0 %vm2299_vm1, %v2298_v15 }
 0x22f   : > { %v552_v35 = vpop.f32.mrb[0].mxu0 }
 0x230   : > { %v1982_v36 = vpop.f32.mrb[1].mxu0  ;;  %v553_v38 = vadd.f32 %v1879_v34, %v552_v35 }
 0x231   : > { %v555_v37 = vpop.f32.mrb[2].mxu0 }
 0x232   : > { %v556_v39 = vadd.f32 %v1879_v34, %v555_v37  ;;  %v1983_v40 = vpop.f32.mrb[3].mxu0 }
 0x234   : > { %v2476_v41 = vpack.c.bf16 %v556_v39, %v553_v38 }
 0x236   : > { %674 = vrot.lane.b32.xlu1 %v2476_v41, %s2300_s16  ;;  %561 = vrot.lane.b32.xlu0 %v2476_v41, %s2301_s20  ;;  %v2485_v42 = vrot.slane %v2476_v41, 4 }
 0x23a   : > { %672 = vrot.lane.b32.xlu1 %v2476_v41, %s2302_s21  ;;  %788 = vrot.lane.b32.xlu0 %v2476_v41, %s2303_s22 }
 0x23e   : > { %790 = vrot.lane.b32.xlu1 %v2476_v41, %s2304_s23  ;;  %904 = vrot.lane.b32.xlu0 %v2476_v41, %s2305_s24 }
 0x242   : > { %906 = vrot.lane.b32.xlu1 %v2476_v41, %s2306_s30  ;;  %1132 = vrot.lane.b32.xlu0 %v2485_v42, %s2300_s16  ;;  %s2308_s16 = smov 64  }
 0x246   : > { %1247 = vrot.lane.b32.xlu0 %v2485_v42, %s2304_s23  ;;  %1021 = vrot.lane.b32.xlu1 %v2485_v42, %s2301_s20  ;;  %s2309_s20 = smov 48   ;;  %s2312_s23 = smov 16  }
 0x24a   : > { %1362 = vrot.lane.b32.xlu0 %v2485_v42, %s2306_s30  ;;  %1130 = vrot.lane.b32.xlu1 %v2485_v42, %s2302_s21  ;;  %s2310_s21 = smov 40  }
 0x24e   : > { %1245 = vrot.lane.b32.xlu1 %v2485_v42, %s2303_s22  ;;  %s2806_s22 = smov 8  }
 0x252   : > { %1360 = vrot.lane.b32.xlu1 %v2485_v42, %s2305_s24  ;;  %s2313_s24 = smov 24  }
 0x256   : > { %734 = vrot.lane.b32.xlu1 %v2476_v41, %s2307_s15 }
 0x2a8   : > { %v675_v43 = vpop.permute.xlu1 %674  ;;  %v562_v44 = vpop.permute.xlu0 %561 }
 0x2a9   : > { %v568_v45 = vsel %vm563_vm2, %v562_v44, 0  ;;  %v680_v46 = vsel %vm563_vm2, %v675_v43, 0 }
 0x2aa   : > { %1985 = vmatpush3.bf16.xpose.msra.mxu0 %v568_v45  ;;  %1997 = vmatpush3.bf16.xpose.msra.mxu1 %v680_v46 }
 0x2ab   : > { %2008 = vmatprep.subr.bf16.mxu1 %v2298_v15  ;;  %1990 = vmatprep.subr.bf16.mxu0 %v2298_v15 }
 0x2ac   : > { %v673_v47 = vpop.permute.xlu1 %672  ;;  %v789_v51 = vpop.permute.xlu0 %788 }
 0x2b0   : > { %v791_v48 = vpop.permute.xlu1 %790  ;;  %v905_v54 = vpop.permute.xlu0 %904 }
 0x2b1   : > { %v796_v49 = vsel %vm563_vm2, %v791_v48, 0  ;;  %1987 = vmatmul.mubr.msk.bf16.vlgmr.msra.gmra.mrb[4].mxu0 %vm563_vm2, %v2476_v41  ;;  %1999 = vmatmul.mubr.msk.bf16.vlgmr.msra.gmra.mrb[0].mxu1 %vm563_vm2, %v673_v47 }
 0x2b2   : > { %2009 = vmatpush3.bf16.xpose.msra.mxu1 %v796_v49  ;;  %2010 = vmatprep.mubr.msk.bf16.mxu1 %vm2299_vm1, %v2298_v15 }
 0x2b3   : > { %2020 = vmatprep.subr.bf16.mxu1 %v2298_v15  ;;  %1992 = vmatprep.mubr.msk.bf16.mxu0 %vm2299_vm1, %v2298_v15 }
 0x2b4   : > { %v907_v50 = vpop.permute.xlu1 %906  ;;  %v1133_v56 = vpop.permute.xlu0 %1132 }
 0x2b5   : > { %v912_v52 = vsel %vm563_vm2, %v907_v50, 0  ;;  %v1138_v57 = vsel %vm563_vm2, %v1133_v56, 0 }
 0x2b8   : > { %v1022_v53 = vpop.permute.xlu1 %1021  ;;  %v1248_v58 = vpop.permute.xlu0 %1247 }
 0x2b9   : > { %2011 = vmatmul.mubr.msk.bf16.vlgmr.msra.gmra.mrb[4].mxu1 %vm563_vm2, %v789_v51  ;;  %v1027_v55 = vsel %vm563_vm2, %v1022_v53, 0  ;;  %v1253_v60 = vsel %vm563_vm2, %v1248_v58, 0 }
 0x2ba   : > { %2021 = vmatpush3.bf16.xpose.msra.mxu1 %v912_v52  ;;  %2022 = vmatprep.mubr.msk.bf16.mxu1 %vm2299_vm1, %v2298_v15 }
 0x2bb   : > { %2032 = vmatprep.subr.bf16.mxu1 %v2298_v15 }
 0x2bc   : > { %v1131_v59 = vpop.permute.xlu1 %1130  ;;  %v1363_v61 = vpop.permute.xlu0 %1362 }
 0x2bd   : > { %v1368_v63 = vsel %vm563_vm2, %v1363_v61, 0 }
 0x2c0   : > { %v1246_v62 = vpop.permute.xlu1 %1245 }
 0x2c1   : > { %2023 = vmatmul.mubr.msk.bf16.vlgmr.msra.gmra.mrb[8].mxu1 %vm563_vm2, %v905_v54 }
 0x2c2   : > { %2033 = vmatpush3.bf16.xpose.msra.mxu1 %v1027_v55  ;;  %2034 = vmatprep.mubr.msk.bf16.mxu1 %vm2299_vm1, %v2298_v15 }
 0x2c3   : > { %2044 = vmatprep.subr.bf16.mxu1 %v2298_v15 }
 0x2c4   : > { %v1361_v2 = vpop.permute.xlu1 %1360 }
 0x2c8   : > { %v2566_v46 = vpop.permute.xlu1 %734 }
 0x2c9   : > { %2035 = vmatmul.mubr.msk.bf16.vlgmr.msra.gmra.mrb[12].mxu1 %vm563_vm2, %v2485_v42 }
 0x2ca   : > { %2045 = vmatpush3.bf16.xpose.msra.mxu1 %v1138_v57  ;;  %2046 = vmatprep.mubr.msk.bf16.mxu1 %vm2299_vm1, %v2298_v15 }
 0x2cb   : > { %2056 = vmatprep.subr.bf16.mxu1 %v2298_v15 }
 0x2d1   : > { %2047 = vmatmul.mubr.msk.bf16.vlgmr.msra.gmra.mrb[16].mxu1 %vm563_vm2, %v1131_v59 }
 0x2d2   : > { %2057 = vmatpush3.bf16.xpose.msra.mxu1 %v1253_v60  ;;  %2058 = vmatprep.mubr.msk.bf16.mxu1 %vm2299_vm1, %v2298_v15 }
 0x2d3   : > { %2068 = vmatprep.subr.bf16.mxu1 %v2298_v15 }
 0x2d9   : > { %2059 = vmatmul.mubr.msk.bf16.vlgmr.msra.gmra.mrb[20].mxu1 %vm563_vm2, %v1246_v62 }
 0x2da   : > { %2069 = vmatpush3.bf16.xpose.msra.mxu1 %v1368_v63  ;;  %2070 = vmatprep.mubr.msk.bf16.mxu1 %vm2299_vm1, %v2298_v15 }
 0x2db   : > { %2080 = vmatprep.subr.bf16.mxu1 %v2298_v15 }
 0x2e1   : > { %2071 = vmatmul.mubr.msk.bf16.vlgmr.msra.gmra.mrb[24].mxu1 %vm563_vm2, %v1361_v2 }
 0x2e2   : > { %2084 = vmatprep.mubr.msk.bf16.mxu1 %vm2299_vm1, %v2298_v15 }
 0x384   : > { %v604_v3 = vpop.f32.mrb[4].mxu0  ;;  %v716_v4 = vpop.f32.mrb[0].mxu1 }
 0x385   : > { %v1988_v5 = vpop.f32.mrb[5].mxu0  ;;  %v2000_v6 = vpop.f32.mrb[1].mxu1  ;;  %v722_v7 = vsel %vm563_vm2, %v716_v4, -inf  ;;  %v610_v8 = vsel %vm563_vm2, %v604_v3, -inf }
 0x386   : > { %v719_v9 = vpop.f32.mrb[2].mxu1  ;;  %723 = vmax.xlane.f32.xlu1 %v722_v7  ;;  %611 = vmax.xlane.f32.xlu0 %v610_v8  ;;  %v607_v10 = vpop.f32.mrb[6].mxu0 }
 0x387   : > { %v1989_v11 = vpop.f32.mrb[7].mxu0  ;;  %v2001_v12 = vpop.f32.mrb[3].mxu1 }
 0x38c   : > { %v2541_v13 = vpop.f32.mrb[4].mxu1 }
 0x38d   : > { %v2012_v14 = vpop.f32.mrb[5].mxu1  ;;  %v838_v40 = vsel %vm563_vm2, %v2541_v13, -inf }
 0x38e   : > { %v835_v16 = vpop.f32.mrb[6].mxu1 }
 0x38f   : > { %v2013_v17 = vpop.f32.mrb[7].mxu1 }
 0x394   : > { %v2543_v18 = vpop.f32.mrb[8].mxu1 }
 0x395   : > { %v2024_v19 = vpop.f32.mrb[9].mxu1  ;;  %v954_v43 = vsel %vm563_vm2, %v2543_v18, -inf }
 0x396   : > { %v951_v20 = vpop.f32.mrb[10].mxu1 }
 0x397   : > { %v2025_v21 = vpop.f32.mrb[11].mxu1 }
 0x39c   : > { %v2545_v22 = vpop.f32.mrb[12].mxu1  ;;  %622 = vrot.lane.b32.xlu0 %v2476_v41, %s2308_s16 }
 0x39d   : > { %v2036_v23 = vpop.f32.mrb[13].mxu1  ;;  %v1069_v44 = vsel %vm563_vm2, %v2545_v22, -inf }
 0x39e   : > { %v1066_v24 = vpop.f32.mrb[14].mxu1 }
 0x39f   : > { %v2037_v25 = vpop.f32.mrb[15].mxu1 }
 0x3a4   : > { %v1174_v26 = vpop.f32.mrb[16].mxu1 }
 0x3a5   : > { %v2048_v27 = vpop.f32.mrb[17].mxu1  ;;  %v1180_v28 = vsel %vm563_vm2, %v1174_v26, -inf }
 0x3a6   : > { %1181 = vmax.xlane.f32.xlu1 %v1180_v28  ;;  %v1177_v29 = vpop.f32.mrb[18].mxu1 }
 0x3a7   : > { %v2049_v30 = vpop.f32.mrb[19].mxu1 }
 0x3ac   : > { %v2550_v31 = vpop.f32.mrb[20].mxu1 }
 0x3ad   : > { %v2060_v32 = vpop.f32.mrb[21].mxu1  ;;  %v1295_v45 = vsel %vm563_vm2, %v2550_v31, -inf }
 0x3ae   : > { %v1292_v33 = vpop.f32.mrb[22].mxu1 }
 0x3af   : > { %v2061_v34 = vpop.f32.mrb[23].mxu1 }
 0x3b0   : > { %v740_v34 = vsel %vm627_vm3, %v2566_v46, 0 }
 0x3b4   : > { %v2552_v35 = vpop.f32.mrb[24].mxu1 }
 0x3b5   : > { %v2072_v36 = vpop.f32.mrb[25].mxu1  ;;  %v1410_v37 = vsel %vm563_vm2, %v2552_v35, -inf }
 0x3b6   : > { %1411 = vmax.xlane.f32.xlu1 %v1410_v37  ;;  %v1407_v38 = vpop.f32.mrb[26].mxu1 }
 0x3b7   : > { %v2073_v39 = vpop.f32.mrb[27].mxu1 }
 0x3bb   : > { %839 = vmax.xlane.f32.xlu0 %v838_v40 }
 0x3bf   : > { %955 = vmax.xlane.f32.xlu0 %v954_v43 }
 0x3c3   : > { %1070 = vmax.xlane.f32.xlu0 %v1069_v44 }
 0x3c7   : > { %1296 = vmax.xlane.f32.xlu0 %v1295_v45 }
 0x3dd   : > { %850 = vrot.lane.b32.xlu0 %v2476_v41, %s2309_s20 }
 0x413   : > { %v724_v47 = vpop.xlane.xlu1 %723  ;;  %v612_v48 = vpop.xlane.xlu0 %611 }
 0x414   : > { %v725_v49 = vsub.f32 %v716_v4, %v724_v47  ;;  %v613_v50 = vsub.f32 %v604_v3, %v612_v48 }
 0x416   : > { %v726_v51 = vmul.f32 1.442695, %v725_v49  ;;  %v614_v52 = vmul.f32 1.442695, %v613_v50 }
 0x417   : > { %v623_v53 = vpop.permute.xlu0 %622 }
 0x418   : > { %2190 = vpow2.f32 %v726_v51  ;;  %v629_v54 = vsel %vm627_vm3, %v623_v53, 0 }
 0x419   : > { %2192 = vpow2.f32 %v614_v52  ;;  %1991 = vmatpush3.bf16.msra.mxu0 %v629_v54 }
 0x41a   : > { %2002 = vmatprep.subr.bf16.mxu0 %v2298_v15 }
 0x422   : > { %v2570_v55 = vpop.eup %2190 }
 0x423   : > { %v2193_v56 = vpop.eup %2192  ;;  %v728_v57 = vsel %vm563_vm2, %v2570_v55, 0.0 }
 0x424   : > { %729 = vadd.xlane.f32.xlu1 %v728_v57  ;;  %v616_v58 = vsel %vm563_vm2, %v2193_v56, 0.0 }
 0x425   : > { %617 = vadd.xlane.f32.xlu0 %v616_v58 }
 0x433   : > { %v1182_v62 = vpop.xlane.xlu1 %1181 }
 0x434   : > { %v1183_v3 = vsub.f32 %v1174_v26, %v1182_v62 }
 0x435   : > { %1081 = vrot.lane.b32.xlu1 %v2485_v42, %s2308_s16 }
 0x436   : > { %v1184_v7 = vmul.f32 1.442695, %v1183_v3 }
 0x443   : > { %v1412_v21 = vpop.xlane.xlu1 %1411 }
 0x448   : > { %v840_v59 = vpop.xlane.xlu0 %839 }
 0x449   : > { %v841_v60 = vsub.f32 %v2541_v13, %v840_v59 }
 0x44b   : > { %v842_v61 = vmul.f32 1.442695, %v841_v60 }
 0x44c   : > { %v956_v63 = vpop.xlane.xlu0 %955 }
 0x44d   : > { %2194 = vpow2.f32 %v842_v61  ;;  %v957_v2 = vsub.f32 %v2543_v18, %v956_v63 }
 0x44f   : > { %v958_v4 = vmul.f32 1.442695, %v957_v2 }
 0x450   : > { %v1071_v5 = vpop.xlane.xlu0 %1070 }
 0x451   : > { %2196 = vpow2.f32 %v958_v4  ;;  %v1072_v6 = vsub.f32 %v2545_v22, %v1071_v5  ;;  %v1413_v22 = vsub.f32 %v2552_v35, %v1412_v21 }
 0x453   : > { %v1073_v8 = vmul.f32 1.442695, %v1072_v6  ;;  %v1414_v23 = vmul.f32 1.442695, %v1413_v22 }
 0x454   : > { %v1297_v18 = vpop.xlane.xlu0 %1296 }
 0x455   : > { %2198 = vpow2.f32 %v1073_v8  ;;  %v1298_v19 = vsub.f32 %v2550_v31, %v1297_v18 }
 0x456   : > { %2200 = vpow2.f32 %v1184_v7 }
 0x457   : > { %v2195_v9 = vpop.eup %2194  ;;  %v1299_v20 = vmul.f32 1.442695, %v1298_v19 }
 0x458   : > { %v844_v10 = vsel %vm563_vm2, %v2195_v9, 0.0  ;;  %v851_v27 = vpop.permute.xlu0 %850 }
 0x459   : > { %845 = vadd.xlane.f32.xlu0 %v844_v10  ;;  %2202 = vpow2.f32 %v1299_v20  ;;  %v856_v36 = vsel %vm627_vm3, %v851_v27, 0 }
 0x45a   : > { %2204 = vpow2.f32 %v1414_v23 }
 0x45b   : > { %v2581_v11 = vpop.eup %2196 }
 0x45c   : > { %v960_v12 = vsel %vm563_vm2, %v2581_v11, 0.0 }
 0x45d   : > { %961 = vadd.xlane.f32.xlu1 %v960_v12 }
 0x45f   : > { %v2585_v13 = vpop.eup %2198 }
 0x460   : > { %v1075_v14 = vsel %vm563_vm2, %v2585_v13, 0.0  ;;  %v2589_v16 = vpop.eup %2200 }
 0x461   : > { %1076 = vadd.xlane.f32.xlu1 %v1075_v14  ;;  %v1186_v17 = vsel %vm563_vm2, %v2589_v16, 0.0 }
 0x463   : > { %v2598_v24 = vpop.eup %2202 }
 0x464   : > { %v1301_v25 = vsel %vm563_vm2, %v2598_v24, 0.0 }
 0x465   : > { %1187 = vadd.xlane.f32.xlu1 %v1186_v17 }
 0x46f   : > { %966 = vrot.lane.b32.xlu0 %v2476_v41, %s2310_s21  ;;  %v2602_v41 = vpop.eup %2204 }
 0x470   : > { %v1416_v26 = vsel %vm563_vm2, %v2602_v41, 0.0 }
 0x476   : > { %1192 = vrot.lane.b32.xlu1 %v2485_v42, %s2307_s15  ;;  %s1925_s15 = sshll.u32 %s2407_s29, 8 }
 0x48e   : > { %1302 = vadd.xlane.f32.xlu0 %v1301_v25 }
 0x49a   : > { %1417 = vadd.xlane.f32.xlu1 %v1416_v26 }
 0x4a4   : > { %1307 = vrot.lane.b32.xlu0 %v2485_v42, %s2309_s20 }
 0x4ab   : > { %1422 = vrot.lane.b32.xlu1 %v2485_v42, %s2310_s21  ;;  %s2747_s21 = scalar_lea.hbm %s2805_s13, %s1925_s15 }
 0x4b1   : > { %v730_v29 = vpop.xlane.xlu1 %729 }
 0x4b2   : > { %v618_v28 = vpop.xlane.xlu0 %617 }
 0x4b3   : > { %2206 = vrcp.f32 %v618_v28 }
 0x4b4   : > { %2208 = vrcp.f32 %v730_v29 }
 0x4b5   : > { %v1082_v37 = vpop.permute.xlu1 %1081 }
 0x4b6   : > { %v1087_v53 = vsel %vm627_vm3, %v1082_v37, 0 }
 0x4bd   : > { %v2207_v30 = vpop.eup %2206 }
 0x4be   : > { %v620_v31 = vmul.f32 %v2207_v30, %v2193_v56  ;;  %v2209_v33 = vpop.eup %2208 }
 0x4bf   : > { %v732_v42 = vmul.f32 %v2209_v33, %v2570_v55 }
 0x4c0   : > { %v621_v32 = vpack.c.bf16 %v620_v31, %v620_v31 }
 0x4c1   : > { %v733_v35 = vpack.c.bf16 %v732_v42, %v732_v42 }
 0x4c2   : > { %1993 = vmatmul.mubr.msk.bf16.vlgmr.msra.gmra.mrb[8].mxu0 %vm563_vm2, %v621_v32 }
 0x4c3   : > { %2003 = vmatpush3.bf16.msra.mxu0 %v740_v34  ;;  %2004 = vmatprep.mubr.msk.bf16.mxu0 %vm2299_vm1, %v2298_v15 }
 0x4c4   : > { %2014 = vmatprep.subr.bf16.mxu0 %v2298_v15 }
 0x4ca   : > { %2005 = vmatmul.mubr.msk.bf16.vlgmr.msra.gmra.mrb[12].mxu0 %vm563_vm2, %v733_v35  ;;  %v2174_v35 = vld [vmem:[%s2797_s5] sm:$0xff]  }
 0x4cb   : > { %2015 = vmatpush3.bf16.msra.mxu0 %v856_v36  ;;  %2016 = vmatprep.mubr.msk.bf16.mxu0 %vm2299_vm1, %v2298_v15 }
 0x4cc   : > { %2026 = vmatprep.subr.bf16.mxu0 %v2298_v15  ;;  %2081 = vmatpush3.bf16.msra.mxu1 %v2174_v35  ;;  %v2183_v35 = vld [vmem:[%s2803_s11 + $0x28] sm:$0xff]  }
 0x4cd   : > { %2082 = vmatprep.subr.bf16.mxu1 %v2298_v15 }
 0x4e6   : > { %v846_v38 = vpop.xlane.xlu0 %845 }
 0x4e7   : > { %2210 = vrcp.f32 %v846_v38  ;;  %v2175_v38 = vld [vmem:[%s2797_s5 + $0x8] sm:$0xff]  }
 0x4e8   : > { %2083 = vmatpush3.bf16.msra.mxu1 %v2175_v38  ;;  %v1905_v38 = vld [vmem:[%s2802_s10] ss:$0 sm:$0xff] }
 0x4e9   : > { %2096 = vmatprep.subr.bf16.mxu1 %v2298_v15 }
 0x4ea   : > { %v962_v39 = vpop.xlane.xlu1 %961  ;;  %v967_v45 = vpop.permute.xlu0 %966 }
 0x4eb   : > { %2212 = vrcp.f32 %v962_v39  ;;  %v972_v48 = vsel %vm627_vm3, %v967_v45, 0 }
 0x4ee   : > { %v1077_v40 = vpop.xlane.xlu1 %1076 }
 0x4ef   : > { %2214 = vrcp.f32 %v1077_v40 }
 0x4f1   : > { %v2211_v43 = vpop.eup %2210 }
 0x4f2   : > { %v848_v44 = vmul.f32 %v2211_v43, %v2195_v9  ;;  %v1188_v50 = vpop.xlane.xlu1 %1187 }
 0x4f3   : > { %2216 = vrcp.f32 %v1188_v50 }
 0x4f4   : > { %v849_v46 = vpack.c.bf16 %v848_v44, %v848_v44 }
 0x4f5   : > { %v2213_v47 = vpop.eup %2212 }
 0x4f6   : > { %2017 = vmatmul.mubr.msk.bf16.vlgmr.msra.gmra.mrb[16].mxu0 %vm563_vm2, %v849_v46  ;;  %v964_v49 = vmul.f32 %v2213_v47, %v2581_v11  ;;  %v1193_v55 = vpop.permute.xlu1 %1192 }
 0x4f7   : > { %2027 = vmatpush3.bf16.msra.mxu0 %v972_v48  ;;  %2028 = vmatprep.mubr.msk.bf16.mxu0 %vm2299_vm1, %v2298_v15  ;;  %v1198_v58 = vsel %vm627_vm3, %v1193_v55, 0 }
 0x4f8   : > { %2038 = vmatprep.subr.bf16.mxu0 %v2298_v15  ;;  %v965_v51 = vpack.c.bf16 %v964_v49, %v964_v49 }
 0x4f9   : > { %v2215_v52 = vpop.eup %2214 }
 0x4fa   : > { %v1079_v54 = vmul.f32 %v2215_v52, %v2585_v13 }
 0x4fc   : > { %v1080_v56 = vpack.c.bf16 %v1079_v54, %v1079_v54 }
 0x4fd   : > { %v2217_v57 = vpop.eup %2216 }
 0x4fe   : > { %2029 = vmatmul.mubr.msk.bf16.vlgmr.msra.gmra.mrb[20].mxu0 %vm563_vm2, %v965_v51  ;;  %v1190_v59 = vmul.f32 %v2217_v57, %v2589_v16 }
 0x4ff   : > { %2039 = vmatpush3.bf16.msra.mxu0 %v1087_v53  ;;  %2040 = vmatprep.mubr.msk.bf16.mxu0 %vm2299_vm1, %v2298_v15 }
 0x500   : > { %2050 = vmatprep.subr.bf16.mxu0 %v2298_v15  ;;  %v1191_v60 = vpack.c.bf16 %v1190_v59, %v1190_v59 }
 0x506   : > { %2041 = vmatmul.mubr.msk.bf16.vlgmr.msra.gmra.mrb[24].mxu0 %vm563_vm2, %v1080_v56  ;;  %v1902_v56 = vld [vmem:[%s2798_s6] ss:$0 sm:$0xff] }
 0x507   : > { %2051 = vmatpush3.bf16.msra.mxu0 %v1198_v58  ;;  %2052 = vmatprep.mubr.msk.bf16.mxu0 %vm2299_vm1, %v2298_v15 }
 0x508   : > { %2062 = vmatprep.subr.bf16.mxu0 %v2298_v15 }
 0x50e   : > { %2053 = vmatmul.mubr.msk.bf16.vlgmr.msra.gmra.mrb[28].mxu0 %vm563_vm2, %v1191_v60 }
 0x50f   : > { %2064 = vmatprep.mubr.msk.bf16.mxu0 %vm2299_vm1, %v2298_v15 }
 0x51b   : > { %v1303_v61 = vpop.xlane.xlu0 %1302 }
 0x51c   : > { %2218 = vrcp.f32 %v1303_v61 }
 0x51f   : > { %v1308_v62 = vpop.permute.xlu0 %1307 }
 0x520   : > { %v1313_v63 = vsel %vm627_vm3, %v1308_v62, 0 }
 0x521   : > { %2063 = vmatpush3.bf16.msra.mxu0 %v1313_v63 }
 0x522   : > { %2074 = vmatprep.subr.bf16.mxu0 %v2298_v15 }
 0x526   : > { %v2219_v2 = vpop.eup %2218 }
 0x527   : > { %v1305_v3 = vmul.f32 %v2219_v2, %v2598_v24  ;;  %v1418_v4 = vpop.xlane.xlu1 %1417 }
 0x528   : > { %2220 = vrcp.f32 %v1418_v4 }
 0x529   : > { %v1306_v5 = vpack.c.bf16 %v1305_v3, %v1305_v3 }
 0x52b   : > { %v1423_v6 = vpop.permute.xlu1 %1422  ;;  %2065 = vmatmul.mubr.msk.bf16.vlgmr.msra.gmra.mrb[32].mxu0 %vm563_vm2, %v1306_v5 }
 0x52c   : > { %v1428_v7 = vsel %vm627_vm3, %v1423_v6, 0  ;;  %2076 = vmatprep.mubr.msk.bf16.mxu0 %vm2299_vm1, %v2298_v15 }
 0x52d   : > { %2075 = vmatpush3.bf16.msra.mxu0 %v1428_v7 }
 0x52e   : > { %2088 = vmatprep.subr.bf16.mxu0 %v2298_v15 }
 0x532   : > { %v2221_v8 = vpop.eup %2220 }
 0x533   : > { %v1420_v9 = vmul.f32 %v2221_v8, %v2602_v41 }
 0x535   : > { %v1421_v10 = vpack.c.bf16 %v1420_v9, %v1420_v9 }
 0x537   : > { %2077 = vmatmul.mubr.msk.bf16.vlgmr.msra.gmra.mrb[36].mxu0 %vm563_vm2, %v1421_v10 }
 0x538   : > { %2092 = vmatprep.mubr.msk.bf16.mxu0 %vm2299_vm1, %v2298_v15 }
 0x595   : > { %v665_v11 = vpop.f32.mrb[8].mxu0 }
 0x596   : > { %671 = vst.msk [vmem:[#allocation2] sm:$0xff] %vm563_vm2, %v665_v11  ;;  %v1994_v12 = vpop.f32.mrb[9].mxu0 }
 0x597   : > { %v668_v13 = vpop.f32.mrb[10].mxu0  ;;  %v2176_v12 = vld [vmem:[%s2801_s9] sm:$0xff]  }
 0x598   : > { %v1995_v14 = vpop.f32.mrb[11].mxu0  ;;  %2089 = vmatpush3.bf16.msra.mxu0 %v2176_v12  ;;  %v2177_v13 = vld [vmem:[%s2801_s9 + $0x8] sm:$0xff]  }
 0x599   : > { %2090 = vmatprep.subr.bf16.mxu0 %v2298_v15 }
 0x59c   : > { %2091 = vmatpush3.bf16.msra.mxu0 %v2177_v13 }
 0x59d   : > { %v776_v16 = vpop.f32.mrb[12].mxu0 }
 0x59e   : > { %783 = vrot.lane.b32.xlu0 %v776_v16, %s2806_s22  ;;  %v2006_v17 = vpop.f32.mrb[13].mxu0 }
 0x59f   : > { %v779_v18 = vpop.f32.mrb[14].mxu0 }
 0x5a0   : > { %v2007_v19 = vpop.f32.mrb[15].mxu0 }
 0x5c9   : > { %v892_v20 = vpop.f32.mrb[16].mxu0 }
 0x5ca   : > { %899 = vrot.lane.b32.xlu0 %v892_v20, %s2312_s23  ;;  %v2018_v21 = vpop.f32.mrb[17].mxu0 }
 0x5cb   : > { %v895_v22 = vpop.f32.mrb[18].mxu0 }
 0x5cc   : > { %v2019_v23 = vpop.f32.mrb[19].mxu0 }
 0x5cd   : > { %v1903_v23 = vld [vmem:[%s2799_s7] ss:$0 sm:$0xff] }
 0x5d1   : > { %v1008_v24 = vpop.f32.mrb[20].mxu0 }
 0x5d2   : > { %1015 = vrot.lane.b32.xlu0 %v1008_v24, %s2313_s24  ;;  %v2030_v25 = vpop.f32.mrb[21].mxu0 }
 0x5d3   : > { %v1011_v41 = vpop.f32.mrb[22].mxu0 }
 0x5d4   : > { %v2031_v26 = vpop.f32.mrb[23].mxu0 }
 0x5d5   : > { %v1904_v26 = vld [vmem:[%s2800_s8] ss:$0 sm:$0xff] }
 0x5d9   : > { %v1123_v27 = vpop.f32.mrb[24].mxu0 }
 0x5da   : > { %1129 = vst.msk [vmem:[#allocation2 + $0x8] sm:$0xff] %vm563_vm2, %v1123_v27  ;;  %v2042_v28 = vpop.f32.mrb[25].mxu0 }
 0x5db   : > { %v1126_v29 = vpop.f32.mrb[26].mxu0 }
 0x5dc   : > { %v2043_v30 = vpop.f32.mrb[27].mxu0 }
 0x5e1   : > { %v1234_v31 = vpop.f32.mrb[28].mxu0 }
 0x5e2   : > { %1241 = vrot.lane.b32.xlu1 %v1234_v31, %s2806_s22  ;;  %v2054_v32 = vpop.f32.mrb[29].mxu0  ;;  %v2178_v31 = vld [vmem:[%s2803_s11] sm:$0xff]   ;;  %s432_s22 = sand.u32 1, %s2288_s26  }
 0x5e3   : > { %v1237_v33 = vpop.f32.mrb[30].mxu0  ;;  %v2179_v32 = vld [vmem:[%s2803_s11 + $0x8] sm:$0xff]   ;;  %s1874_s20 = sshll.u32 %s432_s22, 4  ;;  %s2750_s29 = scalar_lea.sflag [#allocation4], %s432_s22 }
 0x5e4   : > { %v2055_v34 = vpop.f32.mrb[31].mxu0  ;;  %v2180_v33 = vld [vmem:[%s2803_s11 + $0x10] sm:$0xff]  }
 0x5e5   : > { %v2181_v34 = vld [vmem:[%s2803_s11 + $0x18] sm:$0xff]  }
 0x5fe   : > { %v1349_v42 = vpop.f32.mrb[32].mxu0 }
 0x5ff   : > { %1356 = vrot.lane.b32.xlu1 %v1349_v42, %s2312_s23  ;;  %v2066_v36 = vpop.f32.mrb[33].mxu0  ;;  %v2182_v42 = vld [vmem:[%s2803_s11 + $0x20] sm:$0xff]  }
 0x600   : > { %v1352_v37 = vpop.f32.mrb[34].mxu0  ;;  %v2184_v36 = vld [vmem:[%s2803_s11 + $0x30] sm:$0xff]  }
 0x601   : > { %v2067_v39 = vpop.f32.mrb[35].mxu0  ;;  %v2185_v37 = vld [vmem:[%s2803_s11 + $0x38] sm:$0xff]  }
 0x60a   : > { %v1464_v40 = vpop.f32.mrb[36].mxu0 }
 0x60b   : > { %1471 = vrot.lane.b32.xlu1 %v1464_v40, %s2313_s24  ;;  %v2078_v43 = vpop.f32.mrb[37].mxu0  ;;  %s434_s24 = scalar_lea.vmem [#allocation3], %s1874_s20 }
 0x60c   : > { %v1467_v44 = vpop.f32.mrb[38].mxu0  ;;  %s1808_s30 = sshll.u32 %s434_s24, 4  ;;  %s2740_s30 = int_to_ptr.vmem [resolvable:$true] %s1808_s30 }
 0x60d   : > { %v2079_v45 = vpop.f32.mrb[39].mxu0  ;;  %s2234_s23 = scalar_lea.vmem %s2740_s30, 256  ;;  %p2241_p0 = scmp.lt.s32.totalorder %s2740_s30, %s2239_s1 }
 0x60e   : > { %p2235_p11 = scmp.ne.s32.totalorder %s2740_s30, %s2234_s23  ;;  %p2242_p1 = scmp.lt.s32.totalorder %s2240_s2, %s2234_s23 }
 0x610   : > { %v784_v46 = vpop.permute.xlu0 %783  ;;  %p2236_p12 = pnand %p2235_p11, %p2424_p5  ;;  %p2243_p2 = por %p2242_p1, %p2241_p0 }
 0x611   : > { %787 = vst.msk [vmem:[#allocation2] sm:$0xff] %vm786_vm4, %v784_v46 }
 0x612   : > { %p2237_p13 = pneg %p2236_p12 }
 0x614   : > { %p2244_p3 = pnand %p2243_p2, %p2237_p13 }
 0x63c   : > { %v900_v47 = vpop.permute.xlu0 %899 }
 0x63d   : > { %903 = vst.msk [vmem:[#allocation2] sm:$0xff] %vm902_vm5, %v900_v47 }
 0x644   : > { %v1016_v48 = vpop.permute.xlu0 %1015 }
 0x645   : > { %1019 = vst.msk [vmem:[#allocation2] sm:$0xff] %vm1018_vm6, %v1016_v48 }
 0x64c   : > { %v1475_v52 = vld [vmem:[#allocation2] sm:$0xff] }
 0x654   : > { %v1242_v49 = vpop.permute.xlu1 %1241 }
 0x655   : > { %1244 = vst.msk [vmem:[#allocation2 + $0x8] sm:$0xff] %vm786_vm4, %v1242_v49 }
 0x671   : > { %v1357_v50 = vpop.permute.xlu1 %1356 }
 0x672   : > { %1359 = vst.msk [vmem:[#allocation2 + $0x8] sm:$0xff] %vm902_vm5, %v1357_v50 }
 0x67d   : > { %v1472_v51 = vpop.permute.xlu1 %1471 }
 0x67e   : > { %1474 = vst.msk [vmem:[#allocation2 + $0x8] sm:$0xff] %vm1018_vm6, %v1472_v51 }
 0x685   : > { %v1476_v53 = vld [vmem:[#allocation2 + $0x8] sm:$0xff] }
 0x686   : > { %v1477_v54 = vpack.c.bf16 %v1476_v53, %v1475_v52 }
 0x688   : > { %2085 = vmatmul.mubr.msk.bf16.vlgmr.msra.gmra.mrb[28].mxu1 %vm447_vm0, %v1477_v54 }
 0x689   : > { %2112 = vmatprep.mubr.msk.bf16.mxu1 %vm2299_vm1, %v2298_v15  ;;  %2097 = vmatpush3.bf16.msra.mxu1 %v2178_v31 }
 0x68a   : > { %2098 = vmatprep.subr.bf16.mxu1 %v2298_v15 }
 0x68d   : > { %2099 = vmatpush3.bf16.msra.mxu1 %v2179_v32 }
 0x68e   : > { %2100 = vmatprep.subr.bf16.mxu1 %v2298_v15 }
 0x691   : > { %2101 = vmatpush3.bf16.msra.mxu1 %v2180_v33 }
 0x692   : > { %2102 = vmatprep.subr.bf16.mxu1 %v2298_v15 }
 0x695   : > { %2103 = vmatpush3.bf16.msra.mxu1 %v2181_v34 }
 0x696   : > { %2104 = vmatprep.subr.bf16.mxu1 %v2298_v15 }
 0x699   : > { %2105 = vmatpush3.bf16.msra.mxu1 %v2182_v42 }
 0x69a   : > { %2106 = vmatprep.subr.bf16.mxu1 %v2298_v15 }
 0x69d   : > { %2107 = vmatpush3.bf16.msra.mxu1 %v2183_v35 }
 0x69e   : > { %2108 = vmatprep.subr.bf16.mxu1 %v2298_v15 }
 0x6a1   : > { %2109 = vmatpush3.bf16.msra.mxu1 %v2184_v36 }
 0x6a2   : > { %2110 = vmatprep.subr.bf16.mxu1 %v2298_v15 }
 0x6a5   : > { %2111 = vmatpush3.bf16.msra.mxu1 %v2185_v37 }
 0x75b   : > { %v1531_v55 = vpop.f32.mrb[28].mxu1 }
 0x75c   : > { %v1538_v57 = vadd.f32 %v1531_v55, %v2438_v0  ;;  %v2086_v58 = vpop.f32.mrb[29].mxu1 }
 0x75d   : > { %v1534_v59 = vpop.f32.mrb[30].mxu1 }
 0x75e   : > { %v2673_v60 = vadd.f32 %v1902_v56, %v1538_v57  ;;  %v1539_v61 = vadd.f32 %v1534_v59, %v2440_v1  ;;  %v2087_v62 = vpop.f32.mrb[31].mxu1  ;;  %v1911_v59 = vld [vmem:[%s2804_s12] ss:$0 sm:$0xff] }
 0x760   : > { %v2676_v63 = vadd.f32 %v1902_v56, %v1539_v61  ;;  %v1551_v2 = vsel %vm447_vm0, %v2673_v60, 0.0 }
 0x761   : > { %1552 = vadd.xlane.f32.xlu0 %v1551_v2 }
 0x762   : > { %v1554_v3 = vsel %vm447_vm0, %v2676_v63, 0.0 }
 0x763   : > { %1555 = vadd.xlane.f32.xlu1 %v1554_v3 }
 0x7ee   : > { %v1553_v4 = vpop.xlane.xlu0 %1552 }
 0x7ef   : > { %v1557_v5 = vmul.f32 0.03125, %v1553_v4 }
 0x7f0   : > { %v1556_v0 = vpop.xlane.xlu1 %1555 }
 0x7f1   : > { %v1559_v6 = vsub.f32 %v2673_v60, %v1557_v5  ;;  %v1558_v7 = vmul.f32 0.03125, %v1556_v0 }
 0x7f3   : > { %v1560_v8 = vsub.f32 %v2676_v63, %v1558_v7  ;;  %v1561_v1 = vmul.f32 %v1559_v6, %v1559_v6 }
 0x7f5   : > { %v1563_v9 = vsel %vm447_vm0, %v1561_v1, 0.0  ;;  %v1562_v10 = vmul.f32 %v1560_v8, %v1560_v8 }
 0x7f6   : > { %1564 = vadd.xlane.f32.xlu0 %v1563_v9 }
 0x7f7   : > { %v1566_v11 = vsel %vm447_vm0, %v1562_v10, 0.0 }
 0x7fa   : > { %1567 = vadd.xlane.f32.xlu0 %v1566_v11 }
 0x883   : > { %v1565_v14 = vpop.xlane.xlu0 %1564 }
 0x884   : > { %v1569_v16 = vmul.f32 0.03125, %v1565_v14 }
 0x886   : > { %v1571_v17 = vadd.f32 1e-05, %v1569_v16 }
 0x887   : > { %v1568_v18 = vpop.xlane.xlu0 %1567 }
 0x888   : > { %2222 = vrsqrt.f32 %v1571_v17  ;;  %v1570_v19 = vmul.f32 0.03125, %v1568_v18 }
 0x88a   : > { %v1572_v20 = vadd.f32 1e-05, %v1570_v19 }
 0x88c   : > { %2224 = vrsqrt.f32 %v1572_v20 }
 0x892   : > { %v2223_v21 = vpop.eup %2222 }
 0x893   : > { %v1575_v22 = vmul.f32 %v2223_v21, %v1559_v6 }
 0x895   : > { %v1583_v25 = vmul.f32 %v1903_v23, %v1575_v22 }
 0x896   : > { %v2225_v24 = vpop.eup %2224 }
 0x897   : > { %v1576_v41 = vmul.f32 %v2225_v24, %v1560_v8  ;;  %v1591_v28 = vadd.f32 %v1904_v26, %v1583_v25 }
 0x899   : > { %v1584_v27 = vmul.f32 %v1903_v23, %v1576_v41 }
 0x89b   : > { %v1592_v29 = vadd.f32 %v1904_v26, %v1584_v27 }
 0x89d   : > { %v1593_v30 = vpack.c.bf16 %v1592_v29, %v1591_v28 }
 0x89f   : > { %2093 = vmatmul.mubr.msk.bf16.vlgmr.msra.gmra.mrb[40].mxu0 %vm447_vm0, %v1593_v30 }
 0x972   : > { %v1654_v39 = vpop.f32.mrb[40].mxu0 }
 0x973   : > { %v1655_v40 = vadd.f32 %v1905_v38, %v1654_v39  ;;  %v2094_v43 = vpop.f32.mrb[41].mxu0 }
 0x974   : > { %v1657_v44 = vpop.f32.mrb[42].mxu0 }
 0x975   : > { %v1909_v45 = vmul.f32 -1.702, %v1655_v40  ;;  %v1658_v46 = vadd.f32 %v1905_v38, %v1657_v44  ;;  %v2095_v47 = vpop.f32.mrb[43].mxu0 }
 0x977   : > { %v1665_v48 = vmul.f32 1.442695, %v1909_v45  ;;  %v1910_v49 = vmul.f32 -1.702, %v1658_v46 }
 0x979   : > { %2226 = vpow2.f32 %v1665_v48  ;;  %v1667_v15 = vmul.f32 1.442695, %v1910_v49 }
 0x97b   : > { %2228 = vpow2.f32 %v1667_v15 }
 0x983   : > { %v2227_v50 = vpop.eup %2226 }
 0x984   : > { %v1669_v51 = vadd.f32 1.0, %v2227_v50 }
 0x985   : > { %v2229_v52 = vpop.eup %2228 }
 0x986   : > { %2230 = vrcp.f32 %v1669_v51  ;;  %v1670_v53 = vadd.f32 1.0, %v2229_v52 }
 0x988   : > { %2232 = vrcp.f32 %v1670_v53 }
 0x990   : > { %v2231_v54 = vpop.eup %2230 }
 0x991   : > { %v1675_v56 = vmul.f32 %v2231_v54, %v1655_v40 }
 0x992   : > { %v2233_v55 = vpop.eup %2232 }
 0x993   : > { %v1676_v57 = vmul.f32 %v2233_v55, %v1658_v46 }
 0x995   : > { %v1677_v58 = vpack.c.bf16 %v1676_v57, %v1675_v56 }
 0x997   : > { %2113 = vmatmul.mubr.bf16.vlgmr.msra.gmra.mrb[32].mxu1 %v1677_v58 }
 0xa6a   : > { %v1783_v61 = vpop.f32.mrb[32].mxu1 }
 0xa6b   : > { %v1784_v62 = vadd.f32 %v1911_v59, %v1783_v61  ;;  %v2114_v2 = vpop.f32.mrb[33].mxu1 }
 0xa6c   : > { %v1786_v3 = vpop.f32.mrb[34].mxu1 }
 0xa6d   : > { %v1790_v4 = vadd.f32 %v1784_v62, %v2673_v60  ;;  %v1787_v5 = vadd.f32 %v1911_v59, %v1786_v3  ;;  %v2115_v0 = vpop.f32.mrb[35].mxu1 }
 0xa6f   : > { %1792 = vst.msk [vmem:[%s434_s24] sm:$0xff] %vm447_vm0, %v1790_v4  ;;  %v1791_v6 = vadd.f32 %v1787_v5, %v2676_v63 }
 0xa71   : > { %1793 = vst.msk [vmem:[%s434_s24 + $0x8] sm:$0xff] %vm447_vm0, %v1791_v6 }
 0xa72   : > { %2247 = shalt.err (!%p2244_p3)
}
 0xa73   : > { %s2248_s22 = scalar_lea.hbm %s2747_s21, 256  ;;  %s2252_s0 = scalar_lea.hbm %s2805_s13, 512 }
 0xa74   : > { %p2249_p4 = scmp.ne.s32.totalorder %s2747_s21, %s2248_s22  ;;  %p2253_p9 = scmp.lt.u32.totalorder %s2747_s21, %s2805_s13 }
 0xa75   : > { %p2254_p10 = scmp.lt.u32.totalorder %s2252_s0, %s2248_s22  ;;  %p2256_p12 = scmp.lt.u32.totalorder %s2248_s22, %s2747_s21 }
 0xa76   : > { %p2250_p7 = pnand %p2249_p4, %p2424_p5 }
 0xa77   : > { %p2255_p11 = por %p2254_p10, %p2253_p9 }
 0xa78   : > { %p2251_p8 = pneg %p2250_p7 }
 0xa79   : > { %p2257_p13 = por %p2256_p12, %p2255_p11 }
 0xa7b   : > { %p2258_p0 = pnand %p2257_p13, %p2251_p8 }
 0xa7d   : > { %2261 = shalt.err (!%p2258_p0)
}
 0xa7e   : > { %s2315_s2 = smov 128   ;;  %s2815_s20 = smov 8  }
 0xa7f   : > { %2116 = dma.vmem_to_hbm [thread:$0]  (%p2424_p5), %s2740_s30, 256, %s2747_s21, %s2750_s29, %s2315_s2, %s2315_s2, %s2815_s20  }
 0xa80 PF: > { %p2122_p1 = scmp.ge.s32.totalorder %s2296_s28, 2  ;;  %s1823_s23 = sand.u32 1, %s2284_s25  }
 0xa81   : > { %s1824_s22 = scalar_lea.sflag [#allocation4], %s1823_s23 }
 0xa82   : > { %p2119_p2 = pnand %p2122_p1, %p2428_p6 }
 0xa84   : > { %2279 = dma.done.wait (!%p2119_p2), %s1824_s22, 256  }
 0xa85   : > { %2281 = vsyncadd (!%p2119_p2), %s1824_s22, 4294967040  ;;  %p23_p3 = scmp.ge.s32.totalorder %s2411_s14, 4   ;;  %s2816_s25 = smov %s2288_s26 }
 0xa86   : > { %s2817_s26 = smov %s2292_s27  ;;  %s2818_s27 = smov %s2422_s17 }
 0xa87   : > { %s2819_s28 = smov %s2411_s14  ;;  %25 = sbr.rel (!%p23_p3) target bundleno = 7 (0x7), region = 107 }
 0xa8e   :  { %1829 = vsyncpa [#allocation4], 1 }
 0xa8f   :  { %1831 = vsyncpa [#allocation4 + $0x1], 1 }

</bundles_post_ra>
